<compile_context>
chip_gen: v7x
topology: tpu7x:2x2x1
jax: 0.10.0
libtpu: 0.0.40
codegen_flags: <defaults>
</compile_context>

<pallas_src>
import functools
import math

import jax
import jax.numpy as jnp
from jax import lax
from jax.experimental import pallas as pl
from jax.experimental.pallas import tpu as pltpu

INPUT_SIZE = 16
OUTPUT_SIZE = 16

PREFERRED_TN = 4096   # rows per grid step (amortizes per-step overhead)
CHUNK = 256           # lane-chunk width per inner-loop iteration (vreg-safe)


def _round_up(a: int, b: int) -> int:
    return (a + b - 1) // b * b


def _height_self_att_kernel(x_ref, wqkv_ref, bqkv_ref, o_ref, *, chunk):
    d = OUTPUT_SIZE
    tn = x_ref.shape[0]
    n_chunks = tn // chunk          # static; tn is a multiple of chunk

    w = wqkv_ref[...]               # [48, 16], loop-invariant
    b = bqkv_ref[...]               # [48, 1]

    @pl.loop(0, n_chunks)
    def _(c):
        off = pl.multiple_of(c * chunk, chunk)
        xc = x_ref[pl.ds(off, chunk), :].astype(jnp.float32)      # [chunk, 16]

        # Fused Q/K/V projection: contract x's last dim (trans_b on the MXU),
        # no explicit lane<->sublane transpose of x needed. One fused bias.
        qkv = lax.dot_general(
            w, xc, (((1,), (1,)), ((), ())),
            preferred_element_type=jnp.float32) + b               # [48, chunk]
        q = qkv[0 * d:1 * d, :]                                   # [16, chunk]
        k = qkv[1 * d:2 * d, :]
        v = qkv[2 * d:3 * d, :]

        # Analytic (exact in f32) row max of s[j,i,n] = k[j,n]*q[i,n] over j.
        kmax = jnp.max(k, axis=0, keepdims=True)                  # [1, chunk]
        kmin = jnp.min(k, axis=0, keepdims=True)
        m = jnp.where(q >= 0.0, q * kmax, q * kmin)               # [16, chunk]

        # Streamed softmax over j: only [16, chunk] slabs stay live.
        denom = jnp.zeros((d, chunk), jnp.float32)
        num = jnp.zeros((d, chunk), jnp.float32)
        for j in range(d):                                        # static unroll
            e_j = jnp.exp(q * k[j:j + 1, :] - m)                  # [16, chunk]
            denom = denom + e_j
            num = num + e_j * v[j:j + 1, :]

        out_c = num * pl.reciprocal(denom, approx=False)          # [16, chunk]
        # XLU transpose (it has slack) -> store a (chunk, 16) slab; avoids a
        # separate wrapper-side full-HBM transpose pass.
        o_ref[pl.ds(off, chunk), :] = out_c.T.astype(o_ref.dtype)


def height_self_att(x, wq, bq, wk, bk, wv, bv):
    """x: [bc, ch, hcap] with hcap == inputSize (16).
    Weights in torch nn.Linear layout: w*: [out, in] = [16, 16]; b*: [16]."""
    bc, ch, hcap = x.shape
    assert hcap == INPUT_SIZE, "hcap must equal inputSize (16)"
    # torch's final output.view([bc, ch, hcap]) silently requires this:
    assert OUTPUT_SIZE == INPUT_SIZE
    d = OUTPUT_SIZE
    n = bc * ch

    chunk = CHUNK
    # Row tile per grid step: big (amortize ~0.35us/step), but capped at
    # ceil(n/2) rounded to the chunk width so the parallel grid axis has >=2
    # steps for v7x's two TensorCores whenever n is large enough to split.
    tn = min(PREFERRED_TN, _round_up(max(-(-n // 2), 1), chunk))
    n_total = _round_up(n, tn)

    xf = x.reshape(n, hcap)
    if n_total != n:
        xf = jnp.pad(xf, ((0, n_total - n), (0, 0)))

    # Fused QKV weight/bias (torch layout [out, in], stacked along out).
    w_qkv = jnp.concatenate([wq, wk, wv], axis=0).astype(jnp.float32)      # [48, 16]
    b_qkv = jnp.concatenate([bq, bk, bv], axis=0).reshape(3 * d, 1)        # [48, 1]
    b_qkv = b_qkv.astype(jnp.float32)

    out = pl.pallas_call(
        functools.partial(_height_self_att_kernel, chunk=chunk),
        out_shape=jax.ShapeDtypeStruct((n_total, d), x.dtype),
        grid_spec=pltpu.PrefetchScalarGridSpec(
            num_scalar_prefetch=0,
            grid=(n_total // tn,),
            in_specs=[
                pl.BlockSpec((tn, hcap), lambda i: (i, 0)),       # x row tile
                pl.BlockSpec((3 * d, hcap), lambda i: (0, 0)),    # fused Wqkv
                pl.BlockSpec((3 * d, 1), lambda i: (0, 0)),       # fused bias
            ],
            out_specs=pl.BlockSpec((tn, d), lambda i: (i, 0)),    # [N, 16] rows
        ),
        compiler_params=pltpu.CompilerParams(
            dimension_semantics=("parallel",)),
    )(xf, w_qkv, b_qkv)

    # Row slice + free reshape only (no XLA transpose pass).
    return out[:n].reshape(bc, ch, d)


def _reference(x, wq, bq, wk, bk, wv, bv):
    """Pure-JAX reference matching the PyTorch forward exactly."""
    bc, ch, hcap = x.shape
    xf = x.reshape(-1, hcap)
    q = xf @ wq.T + bq
    k = xf @ wk.T + bk
    v = xf @ wv.T + bv
    w = q[:, :, None] * k[:, None, :]          # bmm(Q[:,:,None], K[:,None,:])
    w = jax.nn.softmax(w, axis=2)              # Softmax(dim=2)
    out = jnp.einsum("nij,nj->ni", w, v)       # bmm(W, V[:,:,None]).squeeze(2)
    return out.reshape(bc, ch, OUTPUT_SIZE)


def _init_linear(key, fan_in, fan_out):
    """Deterministic nn.Linear-style init; weight in torch layout [out, in]."""
    kw, kb = jax.random.split(key)
    bound = 1.0 / math.sqrt(fan_in)
    w = jax.random.uniform(kw, (fan_out, fan_in), jnp.float32, -bound, bound)
    b = jax.random.uniform(kb, (fan_out,), jnp.float32, -bound, bound)
    return w, b


if __name__ == "__main__":
    key = jax.random.PRNGKey(0)
    kx, kq, kk, kv = jax.random.split(key, 4)

    bc, ch, hcap = 2, 4, INPUT_SIZE            # input: [bc, ch, hcap]
    x = jax.random.normal(kx, (bc, ch, hcap), jnp.float32)

    wq, bq = _init_linear(kq, INPUT_SIZE, OUTPUT_SIZE)
    wk, bk = _init_linear(kk, INPUT_SIZE, OUTPUT_SIZE)
    wv, bv = _init_linear(kv, INPUT_SIZE, OUTPUT_SIZE)

    out = height_self_att(x, wq, bq, wk, bk, wv, bv)
    out = jax.block_until_ready(out)

    ref = _reference(x, wq, bq, wk, bk, wv, bv)
    assert out.shape == (bc, ch, OUTPUT_SIZE)
    assert jnp.allclose(out, ref, atol=1e-5, rtol=1e-5), "mismatch vs reference"

    print("KERNEL_OK")
</pallas_src>

<mosaic_0001>
module attributes {stable_mosaic.version = 11 : i64} {
  func.func @_height_self_att_kernel(%arg0: i32, %arg1: memref<256x16xf32, #tpu.memory_space<vmem>>, %arg2: memref<48x16xf32, #tpu.memory_space<vmem>>, %arg3: memref<48x1xf32, #tpu.memory_space<vmem>>, %arg4: memref<256x16xf32, #tpu.memory_space<vmem>>) attributes {dimension_semantics = [#tpu.dimension_semantics<parallel>], iteration_bounds = array<i64: 1>, scalar_prefetch = 0 : i64, scratch_operands = 0 : i64, tpu.core_type = #tpu.core_type<tc>, window_params = [{transform_indices = @transform_0, window_bounds = array<i64: 256, 16>}, {pipeline_mode = #tpu.pipeline_mode<synchronous>, transform_indices = @transform_1, window_bounds = array<i64: 48, 16>}, {pipeline_mode = #tpu.pipeline_mode<synchronous>, transform_indices = @transform_2, window_bounds = array<i64: 48, 1>}, {transform_indices = @transform_3, window_bounds = array<i64: 256, 16>}]} {
    %c0 = arith.constant 0 : index
    %c0_0 = arith.constant 0 : index
    %0 = vector.load %arg2[%c0, %c0_0] : memref<48x16xf32, #tpu.memory_space<vmem>>, vector<48x16xf32>
    %c0_1 = arith.constant 0 : index
    %c0_2 = arith.constant 0 : index
    %1 = vector.load %arg3[%c0_1, %c0_2] : memref<48x1xf32, #tpu.memory_space<vmem>>, vector<48x1xf32>
    %c0_i32 = arith.constant 0 : i32
    %c1_i32 = arith.constant 1 : i32
    %2 = arith.muli %c0_i32, %c1_i32 : i32
    %c0_i32_3 = arith.constant 0 : i32
    %3 = arith.addi %c0_i32_3, %2 : i32
    %c256_i32 = arith.constant 256 : i32
    %4 = arith.muli %3, %c256_i32 : i32
    %5 = tpu.assume_multiple %4, 256 : i32
    %6 = arith.index_cast %5 : i32 to index
    %c0_4 = arith.constant 0 : index
    %7 = vector.load %arg1[%6, %c0_4] : memref<256x16xf32, #tpu.memory_space<vmem>>, vector<256x16xf32>
    %cst = arith.constant dense<0.000000e+00> : vector<48x256xf32>
    %8 = tpu.matmul %0, %7, %cst {dimension_numbers = #tpu.dot_dimension_numbers<[1], [1], [0], [0], [0, 0, 1, 0], [], []>} : vector<48x16xf32>, vector<256x16xf32>, vector<48x256xf32> -> vector<48x256xf32>
    %9 = vector.broadcast %1 : vector<48x1xf32> to vector<48x256xf32>
    %10 = arith.addf %8, %9 : vector<48x256xf32>
    %11 = vector.extract_strided_slice %10 {offsets = [0, 0], sizes = [16, 256], strides = [1, 1]} : vector<48x256xf32> to vector<16x256xf32>
    %12 = vector.extract_strided_slice %10 {offsets = [16, 0], sizes = [16, 256], strides = [1, 1]} : vector<48x256xf32> to vector<16x256xf32>
    %13 = vector.extract_strided_slice %10 {offsets = [32, 0], sizes = [16, 256], strides = [1, 1]} : vector<48x256xf32> to vector<16x256xf32>
    %cst_5 = arith.constant dense<0xFF800000> : vector<256xf32>
    %14 = vector.multi_reduction <maximumf>, %12, %cst_5 [0] : vector<16x256xf32> to vector<256xf32>
    %15 = vector.shape_cast %14 : vector<256xf32> to vector<1x256xf32>
    %cst_6 = arith.constant dense<0x7F800000> : vector<256xf32>
    %16 = vector.multi_reduction <minimumf>, %12, %cst_6 [0] : vector<16x256xf32> to vector<256xf32>
    %17 = vector.shape_cast %16 : vector<256xf32> to vector<1x256xf32>
    %cst_7 = arith.constant 0.000000e+00 : f32
    %18 = vector.broadcast %cst_7 : f32 to vector<16x256xf32>
    %19 = arith.cmpf oge, %11, %18 : vector<16x256xf32>
    %20 = vector.broadcast %15 : vector<1x256xf32> to vector<16x256xf32>
    %21 = arith.mulf %11, %20 : vector<16x256xf32>
    %22 = vector.broadcast %17 : vector<1x256xf32> to vector<16x256xf32>
    %23 = arith.mulf %11, %22 : vector<16x256xf32>
    %24 = arith.select %19, %21, %23 : vector<16x256xi1>, vector<16x256xf32>
    %cst_8 = arith.constant 0.000000e+00 : f32
    %25 = vector.broadcast %cst_8 : f32 to vector<16x256xf32>
    %cst_9 = arith.constant 0.000000e+00 : f32
    %26 = vector.broadcast %cst_9 : f32 to vector<16x256xf32>
    %27 = vector.extract_strided_slice %12 {offsets = [0, 0], sizes = [1, 256], strides = [1, 1]} : vector<16x256xf32> to vector<1x256xf32>
    %28 = vector.broadcast %27 : vector<1x256xf32> to vector<16x256xf32>
    %29 = arith.mulf %11, %28 : vector<16x256xf32>
    %30 = arith.subf %29, %24 : vector<16x256xf32>
    %31 = math.exp %30 : vector<16x256xf32>
    %32 = arith.addf %25, %31 : vector<16x256xf32>
    %33 = vector.extract_strided_slice %13 {offsets = [0, 0], sizes = [1, 256], strides = [1, 1]} : vector<16x256xf32> to vector<1x256xf32>
    %34 = vector.broadcast %33 : vector<1x256xf32> to vector<16x256xf32>
    %35 = arith.mulf %31, %34 : vector<16x256xf32>
    %36 = arith.addf %26, %35 : vector<16x256xf32>
    %37 = vector.extract_strided_slice %12 {offsets = [1, 0], sizes = [1, 256], strides = [1, 1]} : vector<16x256xf32> to vector<1x256xf32>
    %38 = vector.broadcast %37 : vector<1x256xf32> to vector<16x256xf32>
    %39 = arith.mulf %11, %38 : vector<16x256xf32>
    %40 = arith.subf %39, %24 : vector<16x256xf32>
    %41 = math.exp %40 : vector<16x256xf32>
    %42 = arith.addf %32, %41 : vector<16x256xf32>
    %43 = vector.extract_strided_slice %13 {offsets = [1, 0], sizes = [1, 256], strides = [1, 1]} : vector<16x256xf32> to vector<1x256xf32>
    %44 = vector.broadcast %43 : vector<1x256xf32> to vector<16x256xf32>
    %45 = arith.mulf %41, %44 : vector<16x256xf32>
    %46 = arith.addf %36, %45 : vector<16x256xf32>
    %47 = vector.extract_strided_slice %12 {offsets = [2, 0], sizes = [1, 256], strides = [1, 1]} : vector<16x256xf32> to vector<1x256xf32>
    %48 = vector.broadcast %47 : vector<1x256xf32> to vector<16x256xf32>
    %49 = arith.mulf %11, %48 : vector<16x256xf32>
    %50 = arith.subf %49, %24 : vector<16x256xf32>
    %51 = math.exp %50 : vector<16x256xf32>
    %52 = arith.addf %42, %51 : vector<16x256xf32>
    %53 = vector.extract_strided_slice %13 {offsets = [2, 0], sizes = [1, 256], strides = [1, 1]} : vector<16x256xf32> to vector<1x256xf32>
    %54 = vector.broadcast %53 : vector<1x256xf32> to vector<16x256xf32>
    %55 = arith.mulf %51, %54 : vector<16x256xf32>
    %56 = arith.addf %46, %55 : vector<16x256xf32>
    %57 = vector.extract_strided_slice %12 {offsets = [3, 0], sizes = [1, 256], strides = [1, 1]} : vector<16x256xf32> to vector<1x256xf32>
    %58 = vector.broadcast %57 : vector<1x256xf32> to vector<16x256xf32>
    %59 = arith.mulf %11, %58 : vector<16x256xf32>
    %60 = arith.subf %59, %24 : vector<16x256xf32>
    %61 = math.exp %60 : vector<16x256xf32>
    %62 = arith.addf %52, %61 : vector<16x256xf32>
    %63 = vector.extract_strided_slice %13 {offsets = [3, 0], sizes = [1, 256], strides = [1, 1]} : vector<16x256xf32> to vector<1x256xf32>
    %64 = vector.broadcast %63 : vector<1x256xf32> to vector<16x256xf32>
    %65 = arith.mulf %61, %64 : vector<16x256xf32>
    %66 = arith.addf %56, %65 : vector<16x256xf32>
    %67 = vector.extract_strided_slice %12 {offsets = [4, 0], sizes = [1, 256], strides = [1, 1]} : vector<16x256xf32> to vector<1x256xf32>
    %68 = vector.broadcast %67 : vector<1x256xf32> to vector<16x256xf32>
    %69 = arith.mulf %11, %68 : vector<16x256xf32>
    %70 = arith.subf %69, %24 : vector<16x256xf32>
    %71 = math.exp %70 : vector<16x256xf32>
    %72 = arith.addf %62, %71 : vector<16x256xf32>
    %73 = vector.extract_strided_slice %13 {offsets = [4, 0], sizes = [1, 256], strides = [1, 1]} : vector<16x256xf32> to vector<1x256xf32>
    %74 = vector.broadcast %73 : vector<1x256xf32> to vector<16x256xf32>
    %75 = arith.mulf %71, %74 : vector<16x256xf32>
    %76 = arith.addf %66, %75 : vector<16x256xf32>
    %77 = vector.extract_strided_slice %12 {offsets = [5, 0], sizes = [1, 256], strides = [1, 1]} : vector<16x256xf32> to vector<1x256xf32>
    %78 = vector.broadcast %77 : vector<1x256xf32> to vector<16x256xf32>
    %79 = arith.mulf %11, %78 : vector<16x256xf32>
    %80 = arith.subf %79, %24 : vector<16x256xf32>
    %81 = math.exp %80 : vector<16x256xf32>
    %82 = arith.addf %72, %81 : vector<16x256xf32>
    %83 = vector.extract_strided_slice %13 {offsets = [5, 0], sizes = [1, 256], strides = [1, 1]} : vector<16x256xf32> to vector<1x256xf32>
    %84 = vector.broadcast %83 : vector<1x256xf32> to vector<16x256xf32>
    %85 = arith.mulf %81, %84 : vector<16x256xf32>
    %86 = arith.addf %76, %85 : vector<16x256xf32>
    %87 = vector.extract_strided_slice %12 {offsets = [6, 0], sizes = [1, 256], strides = [1, 1]} : vector<16x256xf32> to vector<1x256xf32>
    %88 = vector.broadcast %87 : vector<1x256xf32> to vector<16x256xf32>
    %89 = arith.mulf %11, %88 : vector<16x256xf32>
    %90 = arith.subf %89, %24 : vector<16x256xf32>
    %91 = math.exp %90 : vector<16x256xf32>
    %92 = arith.addf %82, %91 : vector<16x256xf32>
    %93 = vector.extract_strided_slice %13 {offsets = [6, 0], sizes = [1, 256], strides = [1, 1]} : vector<16x256xf32> to vector<1x256xf32>
    %94 = vector.broadcast %93 : vector<1x256xf32> to vector<16x256xf32>
    %95 = arith.mulf %91, %94 : vector<16x256xf32>
    %96 = arith.addf %86, %95 : vector<16x256xf32>
    %97 = vector.extract_strided_slice %12 {offsets = [7, 0], sizes = [1, 256], strides = [1, 1]} : vector<16x256xf32> to vector<1x256xf32>
    %98 = vector.broadcast %97 : vector<1x256xf32> to vector<16x256xf32>
    %99 = arith.mulf %11, %98 : vector<16x256xf32>
    %100 = arith.subf %99, %24 : vector<16x256xf32>
    %101 = math.exp %100 : vector<16x256xf32>
    %102 = arith.addf %92, %101 : vector<16x256xf32>
    %103 = vector.extract_strided_slice %13 {offsets = [7, 0], sizes = [1, 256], strides = [1, 1]} : vector<16x256xf32> to vector<1x256xf32>
    %104 = vector.broadcast %103 : vector<1x256xf32> to vector<16x256xf32>
    %105 = arith.mulf %101, %104 : vector<16x256xf32>
    %106 = arith.addf %96, %105 : vector<16x256xf32>
    %107 = vector.extract_strided_slice %12 {offsets = [8, 0], sizes = [1, 256], strides = [1, 1]} : vector<16x256xf32> to vector<1x256xf32>
    %108 = vector.broadcast %107 : vector<1x256xf32> to vector<16x256xf32>
    %109 = arith.mulf %11, %108 : vector<16x256xf32>
    %110 = arith.subf %109, %24 : vector<16x256xf32>
    %111 = math.exp %110 : vector<16x256xf32>
    %112 = arith.addf %102, %111 : vector<16x256xf32>
    %113 = vector.extract_strided_slice %13 {offsets = [8, 0], sizes = [1, 256], strides = [1, 1]} : vector<16x256xf32> to vector<1x256xf32>
    %114 = vector.broadcast %113 : vector<1x256xf32> to vector<16x256xf32>
    %115 = arith.mulf %111, %114 : vector<16x256xf32>
    %116 = arith.addf %106, %115 : vector<16x256xf32>
    %117 = vector.extract_strided_slice %12 {offsets = [9, 0], sizes = [1, 256], strides = [1, 1]} : vector<16x256xf32> to vector<1x256xf32>
    %118 = vector.broadcast %117 : vector<1x256xf32> to vector<16x256xf32>
    %119 = arith.mulf %11, %118 : vector<16x256xf32>
    %120 = arith.subf %119, %24 : vector<16x256xf32>
    %121 = math.exp %120 : vector<16x256xf32>
    %122 = arith.addf %112, %121 : vector<16x256xf32>
    %123 = vector.extract_strided_slice %13 {offsets = [9, 0], sizes = [1, 256], strides = [1, 1]} : vector<16x256xf32> to vector<1x256xf32>
    %124 = vector.broadcast %123 : vector<1x256xf32> to vector<16x256xf32>
    %125 = arith.mulf %121, %124 : vector<16x256xf32>
    %126 = arith.addf %116, %125 : vector<16x256xf32>
    %127 = vector.extract_strided_slice %12 {offsets = [10, 0], sizes = [1, 256], strides = [1, 1]} : vector<16x256xf32> to vector<1x256xf32>
    %128 = vector.broadcast %127 : vector<1x256xf32> to vector<16x256xf32>
    %129 = arith.mulf %11, %128 : vector<16x256xf32>
    %130 = arith.subf %129, %24 : vector<16x256xf32>
    %131 = math.exp %130 : vector<16x256xf32>
    %132 = arith.addf %122, %131 : vector<16x256xf32>
    %133 = vector.extract_strided_slice %13 {offsets = [10, 0], sizes = [1, 256], strides = [1, 1]} : vector<16x256xf32> to vector<1x256xf32>
    %134 = vector.broadcast %133 : vector<1x256xf32> to vector<16x256xf32>
    %135 = arith.mulf %131, %134 : vector<16x256xf32>
    %136 = arith.addf %126, %135 : vector<16x256xf32>
    %137 = vector.extract_strided_slice %12 {offsets = [11, 0], sizes = [1, 256], strides = [1, 1]} : vector<16x256xf32> to vector<1x256xf32>
    %138 = vector.broadcast %137 : vector<1x256xf32> to vector<16x256xf32>
    %139 = arith.mulf %11, %138 : vector<16x256xf32>
    %140 = arith.subf %139, %24 : vector<16x256xf32>
    %141 = math.exp %140 : vector<16x256xf32>
    %142 = arith.addf %132, %141 : vector<16x256xf32>
    %143 = vector.extract_strided_slice %13 {offsets = [11, 0], sizes = [1, 256], strides = [1, 1]} : vector<16x256xf32> to vector<1x256xf32>
    %144 = vector.broadcast %143 : vector<1x256xf32> to vector<16x256xf32>
    %145 = arith.mulf %141, %144 : vector<16x256xf32>
    %146 = arith.addf %136, %145 : vector<16x256xf32>
    %147 = vector.extract_strided_slice %12 {offsets = [12, 0], sizes = [1, 256], strides = [1, 1]} : vector<16x256xf32> to vector<1x256xf32>
    %148 = vector.broadcast %147 : vector<1x256xf32> to vector<16x256xf32>
    %149 = arith.mulf %11, %148 : vector<16x256xf32>
    %150 = arith.subf %149, %24 : vector<16x256xf32>
    %151 = math.exp %150 : vector<16x256xf32>
    %152 = arith.addf %142, %151 : vector<16x256xf32>
    %153 = vector.extract_strided_slice %13 {offsets = [12, 0], sizes = [1, 256], strides = [1, 1]} : vector<16x256xf32> to vector<1x256xf32>
    %154 = vector.broadcast %153 : vector<1x256xf32> to vector<16x256xf32>
    %155 = arith.mulf %151, %154 : vector<16x256xf32>
    %156 = arith.addf %146, %155 : vector<16x256xf32>
    %157 = vector.extract_strided_slice %12 {offsets = [13, 0], sizes = [1, 256], strides = [1, 1]} : vector<16x256xf32> to vector<1x256xf32>
    %158 = vector.broadcast %157 : vector<1x256xf32> to vector<16x256xf32>
    %159 = arith.mulf %11, %158 : vector<16x256xf32>
    %160 = arith.subf %159, %24 : vector<16x256xf32>
    %161 = math.exp %160 : vector<16x256xf32>
    %162 = arith.addf %152, %161 : vector<16x256xf32>
    %163 = vector.extract_strided_slice %13 {offsets = [13, 0], sizes = [1, 256], strides = [1, 1]} : vector<16x256xf32> to vector<1x256xf32>
    %164 = vector.broadcast %163 : vector<1x256xf32> to vector<16x256xf32>
    %165 = arith.mulf %161, %164 : vector<16x256xf32>
    %166 = arith.addf %156, %165 : vector<16x256xf32>
    %167 = vector.extract_strided_slice %12 {offsets = [14, 0], sizes = [1, 256], strides = [1, 1]} : vector<16x256xf32> to vector<1x256xf32>
    %168 = vector.broadcast %167 : vector<1x256xf32> to vector<16x256xf32>
    %169 = arith.mulf %11, %168 : vector<16x256xf32>
    %170 = arith.subf %169, %24 : vector<16x256xf32>
    %171 = math.exp %170 : vector<16x256xf32>
    %172 = arith.addf %162, %171 : vector<16x256xf32>
    %173 = vector.extract_strided_slice %13 {offsets = [14, 0], sizes = [1, 256], strides = [1, 1]} : vector<16x256xf32> to vector<1x256xf32>
    %174 = vector.broadcast %173 : vector<1x256xf32> to vector<16x256xf32>
    %175 = arith.mulf %171, %174 : vector<16x256xf32>
    %176 = arith.addf %166, %175 : vector<16x256xf32>
    %177 = vector.extract_strided_slice %12 {offsets = [15, 0], sizes = [1, 256], strides = [1, 1]} : vector<16x256xf32> to vector<1x256xf32>
    %178 = vector.broadcast %177 : vector<1x256xf32> to vector<16x256xf32>
    %179 = arith.mulf %11, %178 : vector<16x256xf32>
    %180 = arith.subf %179, %24 : vector<16x256xf32>
    %181 = math.exp %180 : vector<16x256xf32>
    %182 = arith.addf %172, %181 : vector<16x256xf32>
    %183 = vector.extract_strided_slice %13 {offsets = [15, 0], sizes = [1, 256], strides = [1, 1]} : vector<16x256xf32> to vector<1x256xf32>
    %184 = vector.broadcast %183 : vector<1x256xf32> to vector<16x256xf32>
    %185 = arith.mulf %181, %184 : vector<16x256xf32>
    %186 = arith.addf %176, %185 : vector<16x256xf32>
    %187 = tpu.reciprocal %182 : vector<16x256xf32> -> vector<16x256xf32>
    %188 = arith.mulf %186, %187 : vector<16x256xf32>
    %189 = tpu.transpose %188, [1, 0] : vector<16x256xf32> -> vector<256x16xf32>
    %190 = arith.index_cast %5 : i32 to index
    %c0_10 = arith.constant 0 : index
    %191 = vector.load %arg4[%190, %c0_10] : memref<256x16xf32, #tpu.memory_space<vmem>>, vector<256x16xf32>
    tpu.vector_store %arg4[%190, %c0_10], %189 {strides = array<i32>} : memref<256x16xf32, #tpu.memory_space<vmem>>, vector<256x16xf32>,
    %c1_i32_11 = arith.constant 1 : i32
    return
  }
  func.func @transform_0(%arg0: i32) -> (i32, i32) {
    %c0_i32 = arith.constant 0 : i32
    %c0_i32_0 = arith.constant 0 : i32
    return %arg0, %c0_i32 : i32, i32
  }
  func.func @transform_1(%arg0: i32) -> (i32, i32) {
    %c0_i32 = arith.constant 0 : i32
    %c0_i32_0 = arith.constant 0 : i32
    %c0_i32_1 = arith.constant 0 : i32
    return %c0_i32, %c0_i32_0 : i32, i32
  }
  func.func @transform_2(%arg0: i32) -> (i32, i32) {
    %c0_i32 = arith.constant 0 : i32
    %c0_i32_0 = arith.constant 0 : i32
    %c0_i32_1 = arith.constant 0 : i32
    return %c0_i32, %c0_i32_0 : i32, i32
  }
  func.func @transform_3(%arg0: i32) -> (i32, i32) {
    %c0_i32 = arith.constant 0 : i32
    %c0_i32_0 = arith.constant 0 : i32
    return %arg0, %c0_i32 : i32, i32
  }
}

</mosaic_0001>

<bundles_post_ra>
// kernel: tpu_custom_call.1
= control target key start
LH: loop header
LB: loop body
LE: loop exit
PB: predicated region body
PF: predicated region fallthrough
CT: control target
= control target key end

     0   :  { %vm88_vm0 = vcmask 130048   ;;  %v1446_v3 = vmov 0   ;;  %v348_v63 = vlaneseq  ;;  %s2423_s0 = inlined_call_operand.vmem [shape: f32[256,16], index: 0, kind: input, shape index: {}]   ;;  %s2424_s1 = inlined_call_operand.vmem [shape: f32[48,16], index: 1, kind: input, shape index: {}]   ;;  %s2425_s2 = inlined_call_operand.vmem [shape: f32[48,1], index: 2, kind: input, shape index: {}]   ;;  %s2426_s3 = inlined_call_operand.vmem [shape: f32[256,16], index: 3, kind: output, shape index: {}]  }
   0x1   :  { %v42_v0 = vld [vmem:[%s2423_s0 + $0x80] sm:$0xff]  ;;  %v43_v1 = vld [vmem:[%s2423_s0 + $0x88] sm:$0xff]  ;;  %vm1475_vm1 = vmpackc.low %vm88_vm0, %vm88_vm0  ;;  %1308 = vset.pattern.permute.xlu0 %v1446_v3  ;;  %1309 = vset.pattern.permute.xlu1 %v1446_v3 }
   0x2   :  { %v1242_v4 = vpack.c.bf16 %v43_v1, %v42_v0  ;;  %v26_v5 = vld [vmem:[%s2423_s0] sm:$0xff]  ;;  %v27_v6 = vld [vmem:[%s2423_s0 + $0x8] sm:$0xff]  ;;  %v44_v7 = vld [vmem:[%s2423_s0 + $0x90] sm:$0xff]  ;;  %v349_v0 = vshrl.u32 %v348_v63, 7 }
   0x3   :  { %v1245_v8 = vpack.c.bf16 %v27_v6, %v26_v5  ;;  %v45_v9 = vld [vmem:[%s2423_s0 + $0x98] sm:$0xff]  ;;  %v28_v11 = vld [vmem:[%s2423_s0 + $0x10] sm:$0xff]  ;;  %v46_v13 = vld [vmem:[%s2423_s0 + $0xa0] sm:$0xff] }
   0x4   :  { %1244 = vmatprep.subr.msk.bf16.mxu0 %vm1475_vm1, %v1242_v4  ;;  %1290 = vmatprep.subr.msk.bf16.mxu1 %vm1475_vm1, %v1242_v4  ;;  %v1248_v10 = vpack.c.bf16 %v45_v9, %v44_v7  ;;  %v29_v12 = vld [vmem:[%s2423_s0 + $0x18] sm:$0xff]  ;;  %v47_v14 = vld [vmem:[%s2423_s0 + $0xa8] sm:$0xff]  ;;  %v1518_v17 = vld [vmem:[%s2424_s1] sm:$0xff]  ;;  %v1689_v3 = vsub.s32 0, %v349_v0  ;;  %v1691_v4 = vsub.s32 1, %v349_v0  ;;  %v1693_v5 = vsub.s32 2, %v349_v0 }
   0x5   :  { %1247 = vmatpush3.bf16.xpose.msk.msra.mxu0 %vm1475_vm1, %v1245_v8  ;;  %1298 = vmatpush3.bf16.xpose.msk.msra.mxu1 %vm1475_vm1, %v1245_v8  ;;  %v1251_v15 = vpack.c.bf16 %v29_v12, %v28_v11  ;;  %v1254_v16 = vpack.c.bf16 %v47_v14, %v46_v13  ;;  %v1523_v18 = vld [vmem:[%s2424_s1 + $0x18] sm:$0xff]  ;;  %v30_v19 = vld [vmem:[%s2423_s0 + $0x20] sm:$0xff]  ;;  %v31_v20 = vld [vmem:[%s2423_s0 + $0x28] sm:$0xff]  ;;  %v1695_v8 = vsub.s32 3, %v349_v0  ;;  %v1699_v12 = vsub.s32 4, %v349_v0 }
   0x6   :  { %1250 = vmatprep.subr.msk.bf16.mxu0 %vm1475_vm1, %v1248_v10  ;;  %1291 = vmatprep.subr.msk.bf16.mxu1 %vm1475_vm1, %v1248_v10  ;;  %v22_v21 = vld [vmem:[%s2425_s2 + $0x10] sm:$0xff]  ;;  %v20_v22 = vld [vmem:[%s2425_s2] sm:$0xff]  ;;  %v49_v24 = vld [vmem:[%s2423_s0 + $0xb8] sm:$0xff]  ;;  %v1257_v25 = vpack.c.bf16 %v31_v20, %v30_v19  ;;  %2463 = vst [vmem:[#allocation2_spill] sm:$0xff] %v1691_v4 }
   0x7   :  { %v48_v23 = vld [vmem:[%s2423_s0 + $0xb0] sm:$0xff]  ;;  %1230 = vmatprep.mubr.msk.f32.mxu0 %vm88_vm0, %v1518_v17  ;;  %1236 = vmatprep.mubr.msk.f32.mxu1 %vm88_vm0, %v1523_v18  ;;  %v23_v26 = vld [vmem:[%s2425_s2 + $0x18] sm:$0xff]  ;;  %v21_v27 = vld [vmem:[%s2425_s2 + $0x8] sm:$0xff] }
   0x8   :  { %70 = vperm.xlu0 %1308, %v22_v21   ;;  %60 = vperm.xlu1 %1309, %v20_v22   ;;  %v1260_v28 = vpack.c.bf16 %v49_v24, %v48_v23  ;;  %v24_v29 = vld [vmem:[%s2425_s2 + $0x20] sm:$0xff]  ;;  %v25_v30 = vld [vmem:[%s2425_s2 + $0x28] sm:$0xff]  ;;  %v32_v31 = vld [vmem:[%s2423_s0 + $0x30] sm:$0xff] }
   0x9   :  { %v33_v32 = vld [vmem:[%s2423_s0 + $0x38] sm:$0xff]  ;;  %v50_v33 = vld [vmem:[%s2423_s0 + $0xc0] sm:$0xff]  ;;  %v51_v34 = vld [vmem:[%s2423_s0 + $0xc8] sm:$0xff] }
   0xa   :  { %v1263_v35 = vpack.c.bf16 %v33_v32, %v32_v31  ;;  %v1266_v36 = vpack.c.bf16 %v51_v34, %v50_v33  ;;  %v34_v37 = vld [vmem:[%s2423_s0 + $0x40] sm:$0xff]  ;;  %v35_v38 = vld [vmem:[%s2423_s0 + $0x48] sm:$0xff]  ;;  %v52_v39 = vld [vmem:[%s2423_s0 + $0xd0] sm:$0xff] }
   0xb   :  { %v53_v40 = vld [vmem:[%s2423_s0 + $0xd8] sm:$0xff]  ;;  %v1269_v41 = vpack.c.bf16 %v35_v38, %v34_v37  ;;  %v36_v43 = vld [vmem:[%s2423_s0 + $0x50] sm:$0xff]  ;;  %v54_v45 = vld [vmem:[%s2423_s0 + $0xe0] sm:$0xff] }
   0xc   :  { %75 = vperm.xlu0 %1308, %v23_v26   ;;  %65 = vperm.xlu1 %1309, %v21_v27   ;;  %v1272_v42 = vpack.c.bf16 %v53_v40, %v52_v39  ;;  %v37_v44 = vld [vmem:[%s2423_s0 + $0x58] sm:$0xff]  ;;  %v55_v46 = vld [vmem:[%s2423_s0 + $0xe8] sm:$0xff]  ;;  %v38_v49 = vld [vmem:[%s2423_s0 + $0x60] sm:$0xff] }
   0xd   :  { %1253 = vmatpush3.bf16.xpose.msk.msra.mxu0 %vm1475_vm1, %v1251_v15  ;;  %1299 = vmatpush3.bf16.xpose.msk.msra.mxu1 %vm1475_vm1, %v1251_v15  ;;  %v1275_v47 = vpack.c.bf16 %v37_v44, %v36_v43  ;;  %v1278_v48 = vpack.c.bf16 %v55_v46, %v54_v45  ;;  %v39_v50 = vld [vmem:[%s2423_s0 + $0x68] sm:$0xff]  ;;  %v56_v51 = vld [vmem:[%s2423_s0 + $0xf0] sm:$0xff]  ;;  %v57_v52 = vld [vmem:[%s2423_s0 + $0xf8] sm:$0xff]  ;;  %v1701_v15 = vsub.s32 5, %v349_v0 }
   0xe   :  { %1256 = vmatprep.subr.msk.bf16.mxu0 %vm1475_vm1, %v1254_v16  ;;  %1292 = vmatprep.subr.msk.bf16.mxu1 %vm1475_vm1, %v1254_v16  ;;  %v1281_v53 = vpack.c.bf16 %v39_v50, %v38_v49  ;;  %v1284_v54 = vpack.c.bf16 %v57_v52, %v56_v51  ;;  %v40_v55 = vld [vmem:[%s2423_s0 + $0x70] sm:$0xff]  ;;  %v41_v56 = vld [vmem:[%s2423_s0 + $0x78] sm:$0xff]  ;;  %v15_v58 = vld [vmem:[%s2424_s1 + $0x8] sm:$0xff]  ;;  %v1703_v16 = vsub.s32 6, %v349_v0 }
   0xf   :  { %v1287_v57 = vpack.c.bf16 %v41_v56, %v40_v55  ;;  %v18_v59 = vld [vmem:[%s2424_s1 + $0x20] sm:$0xff]  ;;  %v16_v60 = vld [vmem:[%s2424_s1 + $0x10] sm:$0xff]  ;;  %v19_v61 = vld [vmem:[%s2424_s1 + $0x28] sm:$0xff] }
  0x10   :  { %80 = vperm.xlu0 %1308, %v24_v29   ;;  %85 = vperm.xlu1 %1309, %v25_v30  }
  0x15   :  { %1259 = vmatpush3.bf16.xpose.msk.msra.mxu0 %vm1475_vm1, %v1257_v25  ;;  %1300 = vmatpush3.bf16.xpose.msk.msra.mxu1 %vm1475_vm1, %v1257_v25  ;;  %v1723_v25 = vsub.s32 7, %v349_v0 }
  0x16   :  { %1262 = vmatprep.subr.msk.bf16.mxu0 %vm1475_vm1, %v1260_v28  ;;  %1293 = vmatprep.subr.msk.bf16.mxu1 %vm1475_vm1, %v1260_v28 }
  0x1d   :  { %1265 = vmatpush3.bf16.xpose.msk.msra.mxu0 %vm1475_vm1, %v1263_v35  ;;  %1301 = vmatpush3.bf16.xpose.msk.msra.mxu1 %vm1475_vm1, %v1263_v35 }
  0x1e   :  { %1268 = vmatprep.subr.msk.bf16.mxu0 %vm1475_vm1, %v1266_v36  ;;  %1294 = vmatprep.subr.msk.bf16.mxu1 %vm1475_vm1, %v1266_v36 }
  0x25   :  { %1271 = vmatpush3.bf16.xpose.msk.msra.mxu0 %vm1475_vm1, %v1269_v41  ;;  %1302 = vmatpush3.bf16.xpose.msk.msra.mxu1 %vm1475_vm1, %v1269_v41 }
  0x26   :  { %1274 = vmatprep.subr.msk.bf16.mxu0 %vm1475_vm1, %v1272_v42  ;;  %1295 = vmatprep.subr.msk.bf16.mxu1 %vm1475_vm1, %v1272_v42 }
  0x2d   :  { %1277 = vmatpush3.bf16.xpose.msk.msra.mxu0 %vm1475_vm1, %v1275_v47  ;;  %1303 = vmatpush3.bf16.xpose.msk.msra.mxu1 %vm1475_vm1, %v1275_v47 }
  0x2e   :  { %1280 = vmatprep.subr.msk.bf16.mxu0 %vm1475_vm1, %v1278_v48  ;;  %1296 = vmatprep.subr.msk.bf16.mxu1 %vm1475_vm1, %v1278_v48 }
  0x35   :  { %1283 = vmatpush3.bf16.xpose.msk.msra.mxu0 %vm1475_vm1, %v1281_v53  ;;  %1304 = vmatpush3.bf16.xpose.msk.msra.mxu1 %vm1475_vm1, %v1281_v53 }
  0x36   :  { %1286 = vmatprep.subr.msk.bf16.mxu0 %vm1475_vm1, %v1284_v54  ;;  %1297 = vmatprep.subr.msk.bf16.mxu1 %vm1475_vm1, %v1284_v54 }
  0x3d   :  { %1289 = vmatpush3.bf16.xpose.msk.msra.mxu0 %vm1475_vm1, %v1287_v57  ;;  %1305 = vmatpush3.bf16.xpose.msk.msra.mxu1 %vm1475_vm1, %v1287_v57 }
  0x44   :  { %1231 = vmatmul.mubr.msk.f32.vlgmr.msra.gmra.mrb[0].mxu0 %vm88_vm0, %v1518_v17  ;;  %1237 = vmatmul.mubr.msk.f32.vlgmr.msra.gmra.mrb[0].mxu1 %vm88_vm0, %v1523_v18 }
  0x45   :  { %1232 = vmatprep.mubr.msk.f32.mxu0 %vm88_vm0, %v15_v58  ;;  %1238 = vmatprep.mubr.msk.f32.mxu1 %vm88_vm0, %v18_v59 }
  0x48   :  { %1233 = vmatmul.mubr.msk.f32.gmra.mrb[2].mxu0 %vm88_vm0, %v15_v58  ;;  %1239 = vmatmul.mubr.msk.f32.gmra.mrb[2].mxu1 %vm88_vm0, %v18_v59 }
  0x49   :  { %1234 = vmatprep.mubr.msk.f32.mxu0 %vm88_vm0, %v16_v60  ;;  %1240 = vmatprep.mubr.msk.f32.mxu1 %vm88_vm0, %v19_v61 }
  0x4c   :  { %1235 = vmatmul.mubr.msk.f32.gmra.mrb[4].mxu0 %vm88_vm0, %v16_v60  ;;  %1241 = vmatmul.mubr.msk.f32.gmra.mrb[4].mxu1 %vm88_vm0, %v19_v61 }
  0x87   :  { %v71_v62 = vpop.permute.xlu0 %70  ;;  %v61_v2 = vpop.permute.xlu1 %60 }
  0x8b   :  { %v76_v1 = vpop.permute.xlu0 %75  ;;  %v66_v13 = vpop.permute.xlu1 %65 }
  0x8f   :  { %v81_v14 = vpop.permute.xlu0 %80  ;;  %v86_v34 = vpop.permute.xlu1 %85 }
 0x117   :  { %v269_v6 = vpop.f32.mrb[0].mxu0  ;;  %v287_v7 = vpop.f32.mrb[0].mxu1 }
 0x118   :  { %v1697_v9 = vadd.f32 %v287_v7, %v76_v1  ;;  %v271_v10 = vpop.f32.mrb[1].mxu0  ;;  %v289_v11 = vpop.f32.mrb[1].mxu1  ;;  %v1705_v17 = vadd.f32 %v269_v6, %v61_v2 }
 0x119   :  { %v1719_v21 = vadd.f32 %v271_v10, %v61_v2  ;;  %v1721_v22 = vadd.f32 %v289_v11, %v76_v1 }
 0x11a   :  { %v1709_v18 = vrot.slane %v1697_v9, %v1689_v3  ;;  %v1713_v19 = vrot.slane %v1697_v9, %v1691_v4  ;;  %v1717_v20 = vrot.slane %v1697_v9, %v1693_v5  ;;  %v1727_v26 = vrot.slane %v1697_v9, %v1695_v8 }
 0x11b   :  { %v275_v23 = vpop.f32.mrb[2].mxu0  ;;  %v293_v24 = vpop.f32.mrb[2].mxu1  ;;  %v1741_v32 = vrot.slane %v1697_v9, %v1699_v12  ;;  %v1755_v37 = vrot.slane %v1697_v9, %v1701_v15  ;;  %vm332_vm2 = vcmp.ge.f32.partialorder %v1705_v17, 0.0  ;;  %vm333_vm4 = vcmp.ge.f32.partialorder %v1719_v21, 0.0 }
 0x11c   :  { %2464 = vst [vmem:[#allocation3_spill] sm:$0xff] %v1709_v18  ;;  %2465 = vst [vmem:[#allocation4_spill] sm:$0xff] %v1713_v19  ;;  %v1729_v27 = vadd.f32 %v293_v24, %v81_v14  ;;  %v277_v28 = vpop.f32.mrb[3].mxu0  ;;  %v295_v29 = vpop.f32.mrb[3].mxu1  ;;  %v1733_v30 = vmul.f32 %v1709_v18, %v1705_v17  ;;  %v1737_v31 = vmul.f32 %v1713_v19, %v1705_v17 }
 0x11d   :  { %2466 = vst [vmem:[#allocation5_spill] sm:$0xff] %v1717_v20  ;;  %2467 = vst [vmem:[#allocation6_spill] sm:$0xff] %v1727_v26  ;;  %v1743_v33 = vadd.f32 %v295_v29, %v81_v14  ;;  %v1747_v35 = vmul.f32 %v1717_v20, %v1705_v17  ;;  %v1751_v36 = vmul.f32 %v1727_v26, %v1705_v17 }
 0x11e   :  { %2468 = vst [vmem:[#allocation7_spill] sm:$0xff] %v1741_v32  ;;  %v1757_v38 = vadd.f32 %v275_v23, %v66_v13  ;;  %v1761_v39 = vrot.slane %v1729_v27, %v1689_v3  ;;  %v1765_v40 = vrot.slane %v1729_v27, %v1691_v4  ;;  %v1767_v41 = vadd.f32 %v277_v28, %v66_v13 }
 0x11f   :  { %v1771_v42 = vrot.slane %v1729_v27, %v1693_v5  ;;  %v1775_v43 = vrot.slane %v1729_v27, %v1695_v8  ;;  %v1779_v44 = vrot.slane %v1743_v33, %v1689_v3  ;;  %v1783_v45 = vrot.slane %v1743_v33, %v1691_v4  ;;  %v281_v46 = vpop.f32.mrb[4].mxu0  ;;  %v299_v47 = vpop.f32.mrb[4].mxu1 }
 0x120   :  { %2469 = vst [vmem:[#allocation8_spill] sm:$0xff] %v1757_v38  ;;  %2470 = vst [vmem:[#allocation9_spill] sm:$0xff] %v1767_v41  ;;  %v1787_v48 = vrot.slane %v1743_v33, %v1693_v5  ;;  %v1791_v49 = vrot.slane %v1743_v33, %v1695_v8  ;;  %v282_v50 = vadd.f32 %v281_v46, %v71_v62  ;;  %v283_v51 = vpop.f32.mrb[5].mxu0  ;;  %v301_v53 = vpop.f32.mrb[5].mxu1  ;;  %vm334_vm3 = vcmp.ge.f32.partialorder %v1757_v38, 0.0 }
 0x121   :  { %2471 = vst [vmem:[#allocation10_spill] sm:$0xff] %v1779_v44  ;;  %v1793_v52 = vadd.f32 %v299_v47, %v86_v34  ;;  %v1795_v54 = vadd.f32 %v283_v51, %v71_v62  ;;  %v1797_v55 = vadd.f32 %v301_v53, %v86_v34  ;;  %v1801_v56 = vrot.slane %v1729_v27, %v1699_v12 }
 0x122   :  { %v1805_v57 = vrot.slane %v1729_v27, %v1701_v15  ;;  %v304_v58 = vmax.f32 %v282_v50, %v1697_v9  ;;  %v318_v59 = vmin.f32 %v282_v50, %v1697_v9  ;;  %v351_v60 = vrot.slane %v282_v50, %v1689_v3 }
 0x123   :  { %v395_v61 = vrot.slane %v282_v50, %v1691_v4  ;;  %v311_v62 = vmax.f32 %v1795_v54, %v1721_v22  ;;  %v325_v63 = vmin.f32 %v1795_v54, %v1721_v22  ;;  %v1817_v0 = vrot.slane %v1795_v54, %v1689_v3 }
 0x124   :  { %v1821_v1 = vrot.slane %v1795_v54, %v1691_v4  ;;  %v305_v2 = vrot.slane %v304_v58, 4  ;;  %v319_v6 = vrot.slane %v318_v59, 4  ;;  %v1824_v7 = vmul.f32 %v351_v60, %v1757_v38 }
 0x125   :  { %v1827_v10 = vmul.f32 %v395_v61, %v1757_v38  ;;  %v312_v11 = vrot.slane %v311_v62, 4  ;;  %v326_v13 = vrot.slane %v325_v63, 4  ;;  %v1831_v14 = vmul.f32 %v1817_v0, %v1767_v41 }
 0x126   :  { %2472 = vst [vmem:[#allocation11_spill] sm:$0xff] %v1824_v7  ;;  %v1835_v23 = vmul.f32 %v1821_v1, %v1767_v41  ;;  %v306_v24 = vmax.f32 %v304_v58, %v305_v2  ;;  %v320_v28 = vmin.f32 %v318_v59, %v319_v6  ;;  %v356_v29 = vmul.f32 %v351_v60, %v1705_v17 }
 0x127   :  { %2473 = vst [vmem:[#allocation12_spill] sm:$0xff] %v1827_v10  ;;  %2474 = vst [vmem:[#allocation13_spill] sm:$0xff] %v1831_v14  ;;  %v400_v34 = vmul.f32 %v395_v61, %v1705_v17  ;;  %v313_v46 = vmax.f32 %v311_v62, %v312_v11  ;;  %v327_v47 = vmin.f32 %v325_v63, %v326_v13  ;;  %vm335_vm5 = vcmp.ge.f32.partialorder %v1767_v41, 0.0 }
 0x128   :  { %2475 = vst [vmem:[#allocation14_spill] sm:$0xff] %v1835_v23  ;;  %v1840_v51 = vrot.slane %v282_v50, %v1693_v5  ;;  %v1843_v53 = vrot.slane %v282_v50, %v1695_v8  ;;  %v307_v26 = vrot.slane %v306_v24, 2  ;;  %v321_v14 = vrot.slane %v320_v28, 2 }
 0x129   :  { %v1846_v20 = vrot.slane %v282_v50, %v1699_v12  ;;  %v1849_v58 = vrot.slane %v282_v50, %v1701_v15  ;;  %v314_v59 = vrot.slane %v313_v46, 2  ;;  %v328_v60 = vrot.slane %v327_v47, 2 }
 0x12a   :  { %2476 = vst [vmem:[#allocation15_spill] sm:$0xff] %v1840_v51  ;;  %2477 = vst [vmem:[#allocation16_spill] sm:$0xff] %v1843_v53  ;;  %v444_v61 = vmul.f32 %v1840_v51, %v1705_v17  ;;  %v488_v62 = vmul.f32 %v1843_v53, %v1705_v17  ;;  %v308_v63 = vmax.f32 %v306_v24, %v307_v26 }
 0x12b   :  { %2478 = vst [vmem:[#allocation17_spill] sm:$0xff] %v1846_v20  ;;  %2479 = vst [vmem:[#allocation18_spill] sm:$0xff] %v1849_v58  ;;  %v322_v2 = vmin.f32 %v320_v28, %v321_v14  ;;  %v532_v6 = vmul.f32 %v1846_v20, %v1705_v17  ;;  %v576_v11 = vmul.f32 %v1849_v58, %v1705_v17 }
 0x12c   :  { %v315_v13 = vmax.f32 %v313_v46, %v314_v59  ;;  %v329_v23 = vmin.f32 %v327_v47, %v328_v60  ;;  %v1864_v19 = vrot.slane %v282_v50, %v1703_v16  ;;  %v1868_v18 = vrot.slane %v1729_v27, %v1703_v16 }
 0x12d   :  { %v309_v26 = vrot.slane %v308_v63, 1  ;;  %v323_v14 = vrot.slane %v322_v2, 1  ;;  %v1871_v24 = vrot.slane %v282_v50, %v1723_v25  ;;  %v1875_v28 = vrot.slane %v1729_v27, %v1723_v25 }
 0x12e   :  { %2480 = vst [vmem:[#allocation19_spill] sm:$0xff] %v1864_v19  ;;  %v316_v20 = vrot.slane %v315_v13, 1  ;;  %v330_v58 = vrot.slane %v329_v23, 1  ;;  %v620_v46 = vmul.f32 %v1864_v19, %v1705_v17  ;;  %v1881_v47 = vrot.slane %v1793_v52, %v1689_v3 }
 0x12f   :  { %2481 = vst [vmem:[#allocation20_spill] sm:$0xff] %v1871_v24  ;;  %2482 = vst [vmem:[#allocation21_spill] sm:$0xff] %v1875_v28  ;;  %v310_v59 = vmax.f32 %v308_v63, %v309_v26  ;;  %v324_v60 = vmin.f32 %v322_v2, %v323_v14  ;;  %v664_v53 = vmul.f32 %v1871_v24, %v1705_v17 }
 0x130   :  { %2483 = vst [vmem:[#allocation22_spill] sm:$0xff] %v1881_v47  ;;  %v1887_v50 = vrot.slane %v1793_v52, %v1691_v4  ;;  %v317_v27 = vmax.f32 %v315_v13, %v316_v20  ;;  %v331_v51 = vmin.f32 %v329_v23, %v330_v58  ;;  %v1891_v10 = vrot.slane %v1793_v52, %v1693_v5 }
 0x131   :  { %v1895_v19 = vrot.slane %v1793_v52, %v1695_v8  ;;  %v336_v63 = vmul.f32 %v310_v59, %v1705_v17  ;;  %v338_v2 = vmul.f32 %v310_v59, %v1757_v38  ;;  %v340_v26 = vmul.f32 %v324_v60, %v1705_v17 }
 0x132   :  { %2484 = vst [vmem:[#allocation23_spill] sm:$0xff] %v1887_v50  ;;  %2485 = vst [vmem:[#allocation24_spill] sm:$0xff] %v1891_v10  ;;  %v342_v14 = vmul.f32 %v324_v60, %v1757_v38  ;;  %v337_v24 = vmul.f32 %v317_v27, %v1719_v21  ;;  %v339_v20 = vmul.f32 %v317_v27, %v1767_v41 }
 0x133   :  { %2486 = vst [vmem:[#allocation25_spill] sm:$0xff] %v1895_v19  ;;  %v341_v23 = vmul.f32 %v331_v51, %v1719_v21  ;;  %v343_v58 = vmul.f32 %v331_v51, %v1767_v41  ;;  %v1907_v13 = vsel %vm332_vm2, %v336_v63, %v340_v26  ;;  %v884_v59 = vmul.f32 %v1741_v32, %v1705_v17 }
 0x134   :  { %v1911_v7 = vsel %vm334_vm3, %v338_v2, %v342_v14  ;;  %v1917_v60 = vrot.slane %v1793_v52, %v1699_v12  ;;  %v360_v63 = vsub.f32 %v356_v29, %v1907_v13  ;;  %v404_v2 = vsub.f32 %v400_v34, %v1907_v13 }
 0x135   :  { %2487 = vst [vmem:[#allocation26_spill] sm:$0xff] %v1911_v7  ;;  %v1921_v27 = vsel %vm333_vm4, %v337_v24, %v341_v23  ;;  %v1925_v51 = vsel %vm335_vm5, %v339_v20, %v343_v58  ;;  %v448_v26 = vsub.f32 %v444_v61, %v1907_v13  ;;  %v492_v14 = vsub.f32 %v488_v62, %v1907_v13 }
 0x136   :  { %2488 = vst [vmem:[#allocation27_spill] sm:$0xff] %v1917_v60  ;;  %v536_v32 = vsub.f32 %v532_v6, %v1907_v13  ;;  %v580_v38 = vsub.f32 %v576_v11, %v1907_v13  ;;  %v364_v7 = vmul.f32 1.442695, %v360_v63  ;;  %v408_v4 = vmul.f32 1.442695, %v404_v2 }
 0x137   :  { %v624_v24 = vsub.f32 %v620_v46, %v1907_v13  ;;  %v668_v23 = vsub.f32 %v664_v53, %v1907_v13  ;;  %v452_v20 = vmul.f32 1.442695, %v448_v26  ;;  %v496_v58 = vmul.f32 1.442695, %v492_v14 }
 0x138   :  { %v540_v41 = vmul.f32 1.442695, %v536_v32  ;;  %v712_v29 = vsub.f32 %v1733_v30, %v1907_v13  ;;  %1310 = vpow2.f32 %v364_v7  ;;  %v584_v34 = vmul.f32 1.442695, %v580_v38 }
 0x139   :  { %v628_v61 = vmul.f32 1.442695, %v624_v24  ;;  %v672_v62 = vmul.f32 1.442695, %v668_v23  ;;  %1312 = vpow2.f32 %v408_v4  ;;  %v756_v11 = vsub.f32 %v1737_v31, %v1907_v13 }
 0x13a   :  { %v716_v6 = vmul.f32 1.442695, %v712_v29  ;;  %v800_v46 = vsub.f32 %v1747_v35, %v1907_v13  ;;  %1314 = vpow2.f32 %v452_v20  ;;  %v844_v53 = vsub.f32 %v1751_v36, %v1907_v13 }
 0x13b   :  { %v888_v32 = vsub.f32 %v884_v59, %v1907_v13  ;;  %v928_v30 = vmul.f32 %v1755_v37, %v1705_v17  ;;  %1316 = vpow2.f32 %v496_v58  ;;  %v760_v38 = vmul.f32 1.442695, %v756_v11 }
 0x13c   :  { %v804_v7 = vmul.f32 1.442695, %v800_v46  ;;  %v1948_v4 = vrot.slane %v1793_v52, %v1701_v15  ;;  %1318 = vpow2.f32 %v540_v41  ;;  %v848_v31 = vmul.f32 1.442695, %v844_v53 }
 0x13d   :  { %v892_v63 = vmul.f32 1.442695, %v888_v32  ;;  %v932_v35 = vsub.f32 %v928_v30, %v1907_v13  ;;  %1320 = vpow2.f32 %v584_v34  ;;  %v1953_v36 = vrot.slane %v1697_v9, %v1703_v16 }
 0x13e   :  { %2489 = vst [vmem:[#allocation28_spill] sm:$0xff] %v1948_v4  ;;  %v1957_v59 = vrot.slane %v1793_v52, %v1703_v16  ;;  %v1961_v2 = vrot.slane %v1697_v9, %v1723_v25  ;;  %1322 = vpow2.f32 %v628_v61  ;;  %v1965_v41 = vrot.slane %v1793_v52, %v1723_v25 }
 0x13f   :  { %v936_v26 = vmul.f32 1.442695, %v932_v35  ;;  %v357_v14 = vmul.f32 %v1817_v0, %v1719_v21  ;;  %1324 = vpow2.f32 %v672_v62  ;;  %v972_v24 = vmul.f32 %v1953_v36, %v1705_v17 }
 0x140   :  { %2490 = vst [vmem:[#allocation29_spill] sm:$0xff] %v1957_v59  ;;  %2491 = vst [vmem:[#allocation30_spill] sm:$0xff] %v1965_v41  ;;  %v1016_v23 = vmul.f32 %v1961_v2, %v1705_v17  ;;  %v401_v9 = vmul.f32 %v1821_v1, %v1719_v21  ;;  %1326 = vpow2.f32 %v716_v6  ;;  %v1978_v52 = vrot.slane %v1795_v54, %v1693_v5 }
 0x141   :  { %v361_v20 = vsub.f32 %v357_v14, %v1921_v27  ;;  %v1982_v0 = vrot.slane %v1795_v54, %v1695_v8  ;;  %1328 = vpow2.f32 %v760_v38  ;;  %v976_v58 = vsub.f32 %v972_v24, %v1907_v13 }
 0x142   :  { %2492 = vst [vmem:[#allocation31_spill] sm:$0xff] %v1978_v52  ;;  %v1020_v29 = vsub.f32 %v1016_v23, %v1907_v13  ;;  %v405_v17 = vsub.f32 %v401_v9, %v1921_v27  ;;  %v1311_v34 = vpop.eup %1310  ;;  %1330 = vpow2.f32 %v804_v7  ;;  %v445_v61 = vmul.f32 %v1978_v52, %v1719_v21 }
 0x143   :  { %2493 = vst [vmem:[#allocation32_spill] sm:$0xff] %v1982_v0  ;;  %v366_v1 = vmul.f32 1.442695, %v361_v20  ;;  %v489_v62 = vmul.f32 %v1982_v0, %v1719_v21  ;;  %v1313_v6 = vpop.eup %1312  ;;  %v384_v11 = vmul.f32 %v1311_v34, %v1761_v39  ;;  %1332 = vpow2.f32 %v848_v31 }
 0x144   :  { %v980_v46 = vmul.f32 1.442695, %v976_v58  ;;  %v1024_v53 = vmul.f32 1.442695, %v1020_v29  ;;  %v1315_v32 = vpop.eup %1314  ;;  %v416_v30 = vadd.f32 %v1313_v6, %v1311_v34  ;;  %v428_v13 = vmul.f32 %v1313_v6, %v1765_v40 }
 0x145   :  { %1334 = vpow2.f32 %v892_v63  ;;  %v410_v38 = vmul.f32 1.442695, %v405_v17  ;;  %v1317_v7 = vpop.eup %1316  ;;  %v472_v35 = vmul.f32 %v1315_v32, %v1771_v42  ;;  %v449_v14 = vsub.f32 %v445_v61, %v1921_v27 }
 0x146   :  { %1336 = vpow2.f32 %v936_v26  ;;  %v493_v24 = vsub.f32 %v489_v62, %v1921_v27  ;;  %v1319_v23 = vpop.eup %1318  ;;  %v432_v9 = vadd.f32 %v428_v13, %v384_v11  ;;  %v460_v20 = vadd.f32 %v1315_v32, %v416_v30 }
 0x147   :  { %v516_v31 = vmul.f32 %v1317_v7, %v1775_v43  ;;  %1338 = vpow2.f32 %v980_v46  ;;  %v1321_v58 = vpop.eup %1320  ;;  %v560_v29 = vmul.f32 %v1319_v23, %v1801_v56  ;;  %v454_v63 = vmul.f32 1.442695, %v449_v14 }
 0x148   :  { %1340 = vpow2.f32 %v1024_v53  ;;  %v498_v17 = vmul.f32 1.442695, %v493_v24  ;;  %v1323_v34 = vpop.eup %1322  ;;  %v476_v6 = vadd.f32 %v472_v35, %v432_v9  ;;  %v504_v0 = vadd.f32 %v1317_v7, %v460_v20 }
 0x149   :  { %v604_v26 = vmul.f32 %v1321_v58, %v1805_v57  ;;  %1342 = vpow2.f32 %v366_v1  ;;  %v1325_v61 = vpop.eup %1324  ;;  %v648_v62 = vmul.f32 %v1323_v34, %v1868_v18  ;;  %v2002_v11 = vrot.slane %v1795_v54, %v1699_v12 }
 0x14a   :  { %1344 = vpow2.f32 %v410_v38  ;;  %v2006_v46 = vrot.slane %v1743_v33, %v1699_v12  ;;  %v1327_v53 = vpop.eup %1326  ;;  %v520_v32 = vadd.f32 %v516_v31, %v476_v6  ;;  %v548_v30 = vadd.f32 %v1319_v23, %v504_v0 }
 0x14b   :  { %2494 = vst [vmem:[#allocation33_spill] sm:$0xff] %v2002_v11  ;;  %v692_v13 = vmul.f32 %v1325_v61, %v1875_v28  ;;  %1346 = vpow2.f32 %v454_v63  ;;  %v1329_v7 = vpop.eup %1328  ;;  %v736_v1 = vmul.f32 %v1327_v53, %v1881_v47  ;;  %v533_v38 = vmul.f32 %v2002_v11, %v1719_v21 }
 0x14c   :  { %1348 = vpow2.f32 %v498_v17  ;;  %v2014_v35 = vrot.slane %v1795_v54, %v1701_v15  ;;  %v1331_v14 = vpop.eup %1330  ;;  %v564_v24 = vadd.f32 %v560_v29, %v520_v32  ;;  %v592_v9 = vadd.f32 %v1321_v58, %v548_v30 }
 0x14d   :  { %v780_v20 = vmul.f32 %v1329_v7, %v1887_v50  ;;  %v2019_v0 = vrot.slane %v1743_v33, %v1701_v15  ;;  %v1333_v23 = vpop.eup %1332  ;;  %v824_v31 = vmul.f32 %v1331_v14, %v1891_v10  ;;  %v537_v63 = vsub.f32 %v533_v38, %v1921_v27 }
 0x14e   :  { %2495 = vst [vmem:[#allocation34_spill] sm:$0xff] %v2014_v35  ;;  %v577_v17 = vmul.f32 %v2014_v35, %v1719_v21  ;;  %v2027_v6 = vrot.slane %v1795_v54, %v1703_v16  ;;  %v608_v58 = vadd.f32 %v604_v26, %v564_v24  ;;  %v636_v32 = vadd.f32 %v1323_v34, %v592_v9 }
 0x14f   :  { %v1335_v29 = vpop.eup %1334  ;;  %v868_v30 = vmul.f32 %v1333_v23, %v1895_v19  ;;  %v2032_v11 = vrot.slane %v1743_v33, %v1703_v16  ;;  %v542_v38 = vmul.f32 1.442695, %v537_v63  ;;  %v2043_v24 = vrot.slane %v1795_v54, %v1723_v25 }
 0x150   :  { %2496 = vst [vmem:[#allocation35_spill] sm:$0xff] %v2027_v6  ;;  %v1337_v52 = vpop.eup %1336  ;;  %v912_v10 = vmul.f32 %v1335_v29, %v1917_v60  ;;  %v581_v50 = vsub.f32 %v577_v17, %v1921_v27  ;;  %v621_v35 = vmul.f32 %v2027_v6, %v1719_v21  ;;  %v652_v28 = vadd.f32 %v648_v62, %v608_v58 }
 0x151   :  { %v2038_v47 = vpop.eup %1338  ;;  %v680_v26 = vadd.f32 %v1325_v61, %v636_v32  ;;  %v956_v34 = vmul.f32 %v1337_v52, %v1948_v4  ;;  %2497 = vst [vmem:[#allocation36_spill] sm:$0xff] %v2043_v24  ;;  %1350 = vpow2.f32 %v542_v38  ;;  %v665_v54 = vmul.f32 %v2043_v24, %v1719_v21 }
 0x152   :  { %v2045_v9 = vpop.eup %1340  ;;  %v2049_v63 = vmul.f32 %v2038_v47, %v1957_v59  ;;  %v586_v17 = vmul.f32 1.442695, %v581_v50  ;;  %v625_v60 = vsub.f32 %v621_v35, %v1921_v27  ;;  %v696_v19 = vadd.f32 %v692_v13, %v652_v28 }
 0x153   :  { %v1343_v6 = vpop.eup %1342  ;;  %v724_v62 = vadd.f32 %v1327_v53, %v680_v26  ;;  %v2054_v61 = vmul.f32 %v2045_v9, %v1965_v41  ;;  %v2061_v50 = vrot.slane %v1743_v33, %v1723_v25  ;;  %v669_v4 = vsub.f32 %v665_v54, %v1921_v27 }
 0x154   :  { %v1345_v58 = vpop.eup %1344  ;;  %v385_v32 = vmul.f32 %v1343_v6, %v1779_v44  ;;  %1352 = vpow2.f32 %v586_v17  ;;  %v630_v59 = vmul.f32 1.442695, %v625_v60  ;;  %v740_v38 = vadd.f32 %v736_v1, %v696_v19 }
 0x155   :  { %v1347_v35 = vpop.eup %1346  ;;  %v768_v28 = vadd.f32 %v1329_v7, %v724_v62  ;;  %v417_v53 = vadd.f32 %v1345_v58, %v1343_v6  ;;  %v429_v13 = vmul.f32 %v1345_v58, %v1783_v45  ;;  %v2068_v17 = vrot.slane %v1721_v22, %v1689_v3 }
 0x156   :  { %v1349_v26 = vpop.eup %1348  ;;  %v473_v41 = vmul.f32 %v1347_v35, %v1787_v48  ;;  %1354 = vpow2.f32 %v630_v59  ;;  %v784_v60 = vadd.f32 %v780_v20, %v740_v38  ;;  %v674_v7 = vmul.f32 1.442695, %v669_v4 }
 0x157   :  { %v812_v44 = vadd.f32 %v1331_v14, %v768_v28  ;;  %v433_v33 = vadd.f32 %v429_v13, %v385_v32  ;;  %v461_v24 = vadd.f32 %v1347_v35, %v417_v53  ;;  %v517_v19 = vmul.f32 %v1349_v26, %v1791_v49  ;;  %v2498_v14 = vld [vmem:[#allocation2_spill] sm:$0xff] }
 0x158   :  { %v709_v1 = vmul.f32 %v2068_v17, %v1719_v21  ;;  %v2075_v6 = vrot.slane %v1797_v55, %v1689_v3  ;;  %v828_v59 = vadd.f32 %v824_v31, %v784_v60  ;;  %1356 = vpow2.f32 %v674_v7 }
 0x159   :  { %v856_v62 = vadd.f32 %v1333_v23, %v812_v44  ;;  %v477_v54 = vadd.f32 %v473_v41, %v433_v33  ;;  %v505_v58 = vadd.f32 %v1349_v26, %v461_v24  ;;  %v2080_v32 = vrot.slane %v1721_v22, %v2498_v14 }
 0x15a   :  { %v713_v20 = vsub.f32 %v709_v1, %v1921_v27  ;;  %v2084_v4 = vrot.slane %v1797_v55, %v2498_v14  ;;  %v872_v35 = vadd.f32 %v868_v30, %v828_v59  ;;  %v2088_v3 = vrot.slane %v1721_v22, %v1693_v5 }
 0x15b   :  { %v900_v38 = vadd.f32 %v1335_v29, %v856_v62  ;;  %v521_v28 = vadd.f32 %v517_v19, %v477_v54  ;;  %v1351_v44 = vpop.eup %1350  ;;  %v753_v23 = vmul.f32 %v2080_v32, %v1719_v21  ;;  %v2094_v31 = vrot.slane %v1797_v55, %v1693_v5 }
 0x15c   :  { %v718_v41 = vmul.f32 1.442695, %v713_v20  ;;  %v2098_v24 = vrot.slane %v1721_v22, %v1695_v8  ;;  %v916_v30 = vadd.f32 %v912_v10, %v872_v35  ;;  %v549_v53 = vadd.f32 %v1351_v44, %v505_v58 }
 0x15d   :  { %v944_v29 = vadd.f32 %v1337_v52, %v900_v38  ;;  %v561_v13 = vmul.f32 %v1351_v44, %v2006_v46  ;;  %v757_v60 = vsub.f32 %v753_v23, %v1921_v27  ;;  %v797_v33 = vmul.f32 %v2088_v3, %v1719_v21 }
 0x15e   :  { %v1353_v26 = vpop.eup %1352  ;;  %1358 = vpow2.f32 %v718_v41  ;;  %v841_v5 = vmul.f32 %v2098_v24, %v1719_v21  ;;  %v960_v19 = vadd.f32 %v956_v34, %v916_v30  ;;  %v2116_v41 = vrot.slane %v1797_v55, %v1695_v8 }
 0x15f   :  { %v988_v7 = vadd.f32 %v2038_v47, %v944_v29  ;;  %v565_v1 = vadd.f32 %v561_v13, %v521_v28  ;;  %v593_v59 = vadd.f32 %v1353_v26, %v549_v53  ;;  %v605_v52 = vmul.f32 %v1353_v26, %v2019_v0 }
 0x160   :  { %v1355_v10 = vpop.eup %1354  ;;  %v762_v62 = vmul.f32 1.442695, %v757_v60  ;;  %v801_v54 = vsub.f32 %v797_v33, %v1921_v27  ;;  %v845_v58 = vsub.f32 %v841_v5, %v1921_v27  ;;  %v1004_v20 = vadd.f32 %v2049_v63, %v960_v19 }
 0x161   :  { %v1032_v14 = vadd.f32 %v2045_v9, %v988_v7  ;;  %v637_v35 = vadd.f32 %v1355_v10, %v593_v59  ;;  %v649_v38 = vmul.f32 %v1355_v10, %v2032_v11  ;;  %v609_v34 = vadd.f32 %v605_v52, %v565_v1  ;;  %v2499_v10 = vld [vmem:[#allocation26_spill] sm:$0xff] }
 0x162   :  { %1360 = vpow2.f32 %v762_v62  ;;  %v806_v47 = vmul.f32 1.442695, %v801_v54  ;;  %v850_v28 = vmul.f32 1.442695, %v845_v58  ;;  %v1048_v44 = vadd.f32 %v2054_v61, %v1004_v20  ;;  %v1357_v63 = vpop.eup %1356  ;;  %v2501_v62 = vld [vmem:[#allocation12_spill] sm:$0xff] }
 0x163   :  { %1362 = vrcp.f32 %v1032_v14  ;;  %v2120_v23 = vrot.slane %v1721_v22, %v1699_v12  ;;  %v653_v9 = vadd.f32 %v649_v38, %v609_v34  ;;  %v2124_v30 = vrot.slane %v1797_v55, %v1699_v12 }
 0x164   :  { %1364 = vpow2.f32 %v806_v47  ;;  %v2128_v29 = vrot.slane %v1721_v22, %v1701_v15  ;;  %v681_v61 = vadd.f32 %v1357_v63, %v637_v35  ;;  %v693_v53 = vmul.f32 %v1357_v63, %v2061_v50  ;;  %v2503_v63 = vld [vmem:[#allocation15_spill] sm:$0xff] }
 0x165   :  { %1366 = vpow2.f32 %v850_v28  ;;  %v885_v8 = vmul.f32 %v2120_v23, %v1719_v21  ;;  %v2137_v26 = vrot.slane %v1797_v55, %v1701_v15  ;;  %v2141_v12 = vrot.slane %v1721_v22, %v1703_v16  ;;  %v2502_v28 = vld [vmem:[#allocation8_spill] sm:$0xff] }
 0x166   :  { %v929_v13 = vmul.f32 %v2128_v29, %v1719_v21  ;;  %v2145_v60 = vrot.slane %v1797_v55, %v1703_v16  ;;  %v697_v33 = vadd.f32 %v693_v53, %v653_v9  ;;  %v2150_v19 = vrot.slane %v1721_v22, %v1723_v25  ;;  %v2500_v16 = vld [vmem:[#allocation11_spill] sm:$0xff] }
 0x167   :  { %v889_v5 = vsub.f32 %v885_v8, %v1921_v27  ;;  %v2154_v7 = vrot.slane %v1797_v55, %v1723_v25  ;;  %v973_v59 = vmul.f32 %v2141_v12, %v1719_v21  ;;  %v362_v52 = vsub.f32 %v2500_v16, %v2499_v10  ;;  %v2504_v8 = vld [vmem:[#allocation16_spill] sm:$0xff] }
 0x168   :  { %v1359_v15 = vpop.eup %1358  ;;  %v933_v1 = vsub.f32 %v929_v13, %v1921_v27  ;;  %v406_v54 = vsub.f32 %v2501_v62, %v2499_v10  ;;  %v1017_v25 = vmul.f32 %v2150_v19, %v1719_v21  ;;  %v446_v9 = vmul.f32 %v2503_v63, %v2502_v28  ;;  %v2505_v21 = vld [vmem:[#allocation17_spill] sm:$0xff]  ;;  %v2506_v63 = vld [vmem:[#allocation18_spill] sm:$0xff] }
 0x169   :  { %v725_v58 = vadd.f32 %v1359_v15, %v681_v61  ;;  %v737_v22 = vmul.f32 %v1359_v15, %v2075_v6  ;;  %v894_v20 = vmul.f32 1.442695, %v889_v5  ;;  %v977_v14 = vsub.f32 %v973_v59, %v1921_v27 }
 0x16a   :  { %v938_v55 = vmul.f32 1.442695, %v933_v1  ;;  %v368_v35 = vmul.f32 1.442695, %v362_v52  ;;  %v412_v38 = vmul.f32 1.442695, %v406_v54  ;;  %v1021_v47 = vsub.f32 %v1017_v25, %v1921_v27 }
 0x16b   :  { %v741_v34 = vadd.f32 %v737_v22, %v697_v33  ;;  %1368 = vpow2.f32 %v894_v20  ;;  %v982_v61 = vmul.f32 1.442695, %v977_v14  ;;  %v490_v13 = vmul.f32 %v2504_v8, %v2502_v28 }
 0x16c   :  { %v1361_v53 = vpop.eup %1360  ;;  %1370 = vpow2.f32 %v938_v55  ;;  %v534_v5 = vmul.f32 %v2505_v21, %v2502_v28  ;;  %v1026_v33 = vmul.f32 1.442695, %v1021_v47  ;;  %v450_v52 = vsub.f32 %v446_v9, %v2499_v10 }
 0x16d   :  { %v1363_v15 = vpop.eup %1362  ;;  %v769_v1 = vadd.f32 %v1361_v53, %v725_v58  ;;  %v781_v59 = vmul.f32 %v1361_v53, %v2084_v4  ;;  %1372 = vpow2.f32 %v368_v35  ;;  %v494_v62 = vsub.f32 %v490_v13, %v2499_v10  ;;  %v2509_v13 = vld [vmem:[#allocation3_spill] sm:$0xff] }
 0x16e   :  { %v1365_v16 = vpop.eup %1364  ;;  %v1056_v27 = vmul.f32 %v1363_v15, %v1048_v44  ;;  %1374 = vpow2.f32 %v982_v61  ;;  %v456_v55 = vmul.f32 1.442695, %v450_v52  ;;  %v538_v44 = vsub.f32 %v534_v5, %v2499_v10  ;;  %v2508_v61 = vld [vmem:[#allocation20_spill] sm:$0xff] }
 0x16f   :  { %v1367_v54 = vpop.eup %1366  ;;  %v785_v22 = vadd.f32 %v781_v59, %v741_v34  ;;  %v813_v20 = vadd.f32 %v1365_v16, %v769_v1  ;;  %v825_v25 = vmul.f32 %v1365_v16, %v2094_v31  ;;  %1376 = vpow2.f32 %v1026_v33  ;;  %v2507_v34 = vld [vmem:[#allocation19_spill] sm:$0xff]  ;;  %v2510_v16 = vld [vmem:[#allocation4_spill] sm:$0xff] }
 0x170   :  { %1060 = vxpose.xlu0.b32.start [1/2] (short) %v1056_v27, 128  ;;  %v869_v58 = vmul.f32 %v1367_v54, %v2116_v41  ;;  %1378 = vpow2.f32 %v412_v38  ;;  %v500_v14 = vmul.f32 1.442695, %v494_v62  ;;  %v578_v9 = vmul.f32 %v2506_v63, %v2502_v28 }
 0x171   :  { %v829_v35 = vadd.f32 %v825_v25, %v785_v22  ;;  %v857_v47 = vadd.f32 %v1367_v54, %v813_v20  ;;  %1380 = vpow2.f32 %v456_v55  ;;  %v622_v53 = vmul.f32 %v2507_v34, %v2502_v28  ;;  %v2511_v54 = vld [vmem:[#allocation5_spill] sm:$0xff]  ;;  %v2512_v20 = vld [vmem:[#allocation6_spill] sm:$0xff] }
 0x172   :  { %v666_v8 = vmul.f32 %v2508_v61, %v2502_v28  ;;  %v710_v21 = vmul.f32 %v2509_v13, %v2502_v28  ;;  %1382 = vpow2.f32 %v500_v14  ;;  %v544_v15 = vmul.f32 1.442695, %v538_v44 }
 0x173   :  { %v873_v38 = vadd.f32 %v869_v58, %v829_v35  ;;  %v582_v1 = vsub.f32 %v578_v9, %v2499_v10  ;;  %v626_v5 = vsub.f32 %v622_v53, %v2499_v10  ;;  %v754_v27 = vmul.f32 %v2510_v16, %v2502_v28 }
 0x174   :  { %v670_v59 = vsub.f32 %v666_v8, %v2499_v10  ;;  %v714_v33 = vsub.f32 %v710_v21, %v2499_v10  ;;  %1384 = vpow2.f32 %v544_v15  ;;  %v798_v22 = vmul.f32 %v2511_v54, %v2502_v28 }
 0x175   :  { %v1369_v52 = vpop.eup %1368  ;;  %v588_v62 = vmul.f32 1.442695, %v582_v1  ;;  %v842_v25 = vmul.f32 %v2512_v20, %v2502_v28  ;;  %v632_v35 = vmul.f32 1.442695, %v626_v5  ;;  %v758_v53 = vsub.f32 %v754_v27, %v2499_v10 }
 0x176   :  { %v1371_v58 = vpop.eup %1370  ;;  %v901_v55 = vadd.f32 %v1369_v52, %v857_v47  ;;  %v913_v14 = vmul.f32 %v1369_v52, %v2124_v30  ;;  %v676_v44 = vmul.f32 1.442695, %v670_v59  ;;  %v720_v34 = vmul.f32 1.442695, %v714_v33 }
 0x177   :  { %v1373_v63 = vpop.eup %1372  ;;  %v957_v9 = vmul.f32 %v1371_v58, %v2137_v26  ;;  %1386 = vpow2.f32 %v588_v62  ;;  %v764_v1 = vmul.f32 1.442695, %v758_v53  ;;  %v802_v5 = vsub.f32 %v798_v22, %v2499_v10 }
 0x178   :  { %v1375_v61 = vpop.eup %1374  ;;  %v917_v8 = vadd.f32 %v913_v14, %v873_v38  ;;  %v945_v13 = vadd.f32 %v1371_v58, %v901_v55  ;;  %v386_v21 = vmul.f32 %v1373_v63, %v1761_v39  ;;  %1388 = vpow2.f32 %v632_v35  ;;  %v2513_v55 = vld [vmem:[#allocation7_spill] sm:$0xff] }
 0x179   :  { %v1377_v15 = vpop.eup %1376  ;;  %v1001_v47 = vmul.f32 %v1375_v61, %v2145_v60  ;;  %1390 = vpow2.f32 %v676_v44  ;;  %v808_v62 = vmul.f32 1.442695, %v802_v5  ;;  %v846_v58 = vsub.f32 %v842_v25, %v2499_v10 }
 0x17a   :  { %v1379_v59 = vpop.eup %1378  ;;  %v961_v16 = vadd.f32 %v957_v9, %v917_v8  ;;  %v989_v52 = vadd.f32 %v1375_v61, %v945_v13  ;;  %v1045_v33 = vmul.f32 %v1377_v15, %v2154_v7  ;;  %1392 = vpow2.f32 %v720_v34 }
 0x17b   :  { %v418_v27 = vadd.f32 %v1379_v59, %v1373_v63  ;;  %v430_v38 = vmul.f32 %v1379_v59, %v1765_v40  ;;  %1394 = vpow2.f32 %v764_v1  ;;  %v1381_v39 = vpop.eup %1380  ;;  %v886_v14 = vmul.f32 %v2513_v55, %v2502_v28 }
 0x17c   :  { %v1005_v54 = vadd.f32 %v1001_v47, %v961_v16  ;;  %v1033_v20 = vadd.f32 %v1377_v15, %v989_v52  ;;  %v1383_v22 = vpop.eup %1382  ;;  %v474_v9 = vmul.f32 %v1381_v39, %v1771_v42  ;;  %1396 = vpow2.f32 %v808_v62 }
 0x17d   :  { %v434_v35 = vadd.f32 %v430_v38, %v386_v21  ;;  %v462_v44 = vadd.f32 %v1381_v39, %v418_v27  ;;  %v518_v40 = vmul.f32 %v1383_v22, %v1775_v43  ;;  %v852_v63 = vmul.f32 1.442695, %v846_v58  ;;  %v2515_v39 = vld [vmem:[#allocation21_spill] sm:$0xff] }
 0x17e   :  { %v1049_v34 = vadd.f32 %v1045_v33, %v1005_v54  ;;  %1398 = vrcp.f32 %v1033_v20  ;;  %v1385_v53 = vpop.eup %1384  ;;  %v890_v13 = vsub.f32 %v886_v14, %v2499_v10  ;;  %v930_v25 = vmul.f32 %v1755_v37, %v2502_v28  ;;  %v2514_v33 = vld [vmem:[#allocation13_spill] sm:$0xff] }
 0x17f   :  { %v478_v61 = vadd.f32 %v474_v9, %v434_v35  ;;  %v506_v8 = vadd.f32 %v1383_v22, %v462_v44  ;;  %v562_v15 = vmul.f32 %v1385_v53, %v1801_v56  ;;  %1400 = vpow2.f32 %v852_v63  ;;  %v2516_v35 = vld [vmem:[#allocation22_spill] sm:$0xff]  ;;  %v2517_v9 = vld [vmem:[#allocation23_spill] sm:$0xff] }
 0x180   :  { %v974_v42 = vmul.f32 %v1953_v36, %v2502_v28  ;;  %v1018_v21 = vmul.f32 %v1961_v2, %v2502_v28  ;;  %v896_v5 = vmul.f32 1.442695, %v890_v13  ;;  %v934_v59 = vsub.f32 %v930_v25, %v2499_v10  ;;  %v2518_v63 = vld [vmem:[#allocation14_spill] sm:$0xff] }
 0x181   :  { %v1387_v47 = vpop.eup %1386  ;;  %v522_v43 = vadd.f32 %v518_v40, %v478_v61  ;;  %v550_v1 = vadd.f32 %v1385_v53, %v506_v8  ;;  %v363_v27 = vsub.f32 %v2514_v33, %v1925_v51  ;;  %v407_v53 = vsub.f32 %v2518_v63, %v1925_v51  ;;  %v2520_v61 = vld [vmem:[#allocation31_spill] sm:$0xff] }
 0x182   :  { %v1389_v16 = vpop.eup %1388  ;;  %v606_v52 = vmul.f32 %v1387_v47, %v1805_v57  ;;  %v978_v37 = vsub.f32 %v974_v42, %v2499_v10  ;;  %v1022_v56 = vsub.f32 %v1018_v21, %v2499_v10  ;;  %1402 = vpow2.f32 %v896_v5  ;;  %v2521_v42 = vld [vmem:[#allocation32_spill] sm:$0xff]  ;;  %v2528_v63 = vld [vmem:[#allocation27_spill] sm:$0xff] }
 0x183   :  { %v1391_v36 = vpop.eup %1390  ;;  %v566_v38 = vadd.f32 %v562_v15, %v522_v43  ;;  %v594_v62 = vadd.f32 %v1387_v47, %v550_v1  ;;  %v650_v2 = vmul.f32 %v1389_v16, %v1868_v18  ;;  %v940_v20 = vmul.f32 1.442695, %v934_v59  ;;  %v2519_v18 = vld [vmem:[#allocation9_spill] sm:$0xff]  ;;  %v2522_v43 = vld [vmem:[#allocation24_spill] sm:$0xff] }
 0x184   :  { %v1393_v28 = vpop.eup %1392  ;;  %v694_v54 = vmul.f32 %v1391_v36, %v2515_v39  ;;  %v984_v58 = vmul.f32 1.442695, %v978_v37  ;;  %v1028_v55 = vmul.f32 1.442695, %v1022_v56  ;;  %v370_v44 = vmul.f32 1.442695, %v363_v27 }
 0x185   :  { %v1395_v57 = vpop.eup %1394  ;;  %v610_v14 = vadd.f32 %v606_v52, %v566_v38  ;;  %v638_v22 = vadd.f32 %v1389_v16, %v594_v62  ;;  %v738_v10 = vmul.f32 %v1393_v28, %v2516_v35  ;;  %1404 = vpow2.f32 %v940_v20  ;;  %v2524_v39 = vld [vmem:[#allocation25_spill] sm:$0xff] }
 0x186   :  { %v782_v40 = vmul.f32 %v1395_v57, %v2517_v9  ;;  %v447_v8 = vmul.f32 %v2520_v61, %v2519_v18  ;;  %v1397_v13 = vpop.eup %1396  ;;  %1406 = vpow2.f32 %v984_v58  ;;  %v491_v21 = vmul.f32 %v2521_v42, %v2519_v18  ;;  %v2525_v58 = vld [vmem:[#allocation34_spill] sm:$0xff] }
 0x187   :  { %v654_v25 = vadd.f32 %v650_v2, %v610_v14  ;;  %v682_v15 = vadd.f32 %v1391_v36, %v638_v22  ;;  %v826_v1 = vmul.f32 %v1397_v13, %v2522_v43  ;;  %1408 = vpow2.f32 %v1028_v55  ;;  %v2523_v36 = vld [vmem:[#allocation33_spill] sm:$0xff] }
 0x188   :  { %v1399_v47 = vpop.eup %1398  ;;  %v414_v5 = vmul.f32 1.442695, %v407_v53  ;;  %v451_v59 = vsub.f32 %v447_v8, %v1925_v51  ;;  %1410 = vpow2.f32 %v370_v44  ;;  %v495_v27 = vsub.f32 %v491_v21, %v1925_v51 }
 0x189   :  { %v1057_v16 = vmul.f32 %v1399_v47, %v1049_v34  ;;  %v698_v52 = vadd.f32 %v694_v54, %v654_v25  ;;  %v726_v37 = vadd.f32 %v1393_v28, %v682_v15  ;;  %v1401_v56 = vpop.eup %1400  ;;  %v535_v38 = vmul.f32 %v2523_v36, %v2519_v18  ;;  %v2526_v54 = vld [vmem:[#allocation35_spill] sm:$0xff] }
 0x18a   :  { %1412 = vpow2.f32 %v414_v5  ;;  %v458_v33 = vmul.f32 1.442695, %v451_v59  ;;  %v870_v20 = vmul.f32 %v1401_v56, %v2524_v39  ;;  %v579_v55 = vmul.f32 %v2525_v58, %v2519_v18 }
 0x18b   :  { %1092 = vxpose.xlu1.b32.start [1/2] (short) %v1057_v16, 128  ;;  %v742_v62 = vadd.f32 %v738_v10, %v698_v52  ;;  %v770_v2 = vadd.f32 %v1395_v57, %v726_v37  ;;  %v502_v34 = vmul.f32 1.442695, %v495_v27  ;;  %v539_v28 = vsub.f32 %v535_v38, %v1925_v51  ;;  %v2527_v10 = vld [vmem:[#allocation36_spill] sm:$0xff] }
 0x18c   :  { %1414 = vpow2.f32 %v458_v33  ;;  %v623_v14 = vmul.f32 %v2526_v54, %v2519_v18  ;;  %v1403_v22 = vpop.eup %1402  ;;  %v583_v9 = vsub.f32 %v579_v55, %v1925_v51  ;;  %v667_v57 = vmul.f32 %v2527_v10, %v2519_v18  ;;  %v2529_v52 = vld [vmem:[#allocation28_spill] sm:$0xff] }
 0x18d   :  { %v786_v35 = vadd.f32 %v782_v40, %v742_v62  ;;  %v814_v44 = vadd.f32 %v1397_v13, %v770_v2  ;;  %v914_v53 = vmul.f32 %v1403_v22, %v2528_v63  ;;  %1416 = vpow2.f32 %v502_v34 }
 0x18e   :  { %v546_v61 = vmul.f32 1.442695, %v539_v28  ;;  %v627_v8 = vsub.f32 %v623_v14, %v1925_v51  ;;  %v590_v42 = vmul.f32 1.442695, %v583_v9  ;;  %v671_v21 = vsub.f32 %v667_v57, %v1925_v51 }
 0x18f   :  { %v830_v25 = vadd.f32 %v826_v1, %v786_v35  ;;  %v858_v15 = vadd.f32 %v1401_v56, %v814_v44  ;;  %v1405_v47 = vpop.eup %1404  ;;  %v711_v13 = vmul.f32 %v2068_v17, %v2519_v18  ;;  %v755_v43 = vmul.f32 %v2080_v32, %v2519_v18  ;;  %v2530_v56 = vld [vmem:[#allocation29_spill] sm:$0xff]  ;;  %v2531_v17 = vld [vmem:[#allocation30_spill] sm:$0xff] }
 0x190   :  { %1418 = vpow2.f32 %v546_v61  ;;  %v634_v40 = vmul.f32 1.442695, %v627_v8  ;;  %v1407_v5 = vpop.eup %1406  ;;  %v958_v37 = vmul.f32 %v1405_v47, %v2529_v52  ;;  %v678_v27 = vmul.f32 1.442695, %v671_v21 }
 0x191   :  { %v874_v59 = vadd.f32 %v870_v20, %v830_v25  ;;  %v902_v16 = vadd.f32 %v1403_v22, %v858_v15  ;;  %1420 = vpow2.f32 %v590_v42  ;;  %v1409_v1 = vpop.eup %1408  ;;  %v1002_v33 = vmul.f32 %v1407_v5, %v2530_v56  ;;  %v2532_v20 = vld [vmem:[#allocation10_spill] sm:$0xff] }
 0x192   :  { %1422 = vpow2.f32 %v634_v40  ;;  %v715_v36 = vsub.f32 %v711_v13, %v1925_v51  ;;  %v1411_v38 = vpop.eup %1410  ;;  %v1046_v39 = vmul.f32 %v1409_v1, %v2531_v17  ;;  %v759_v32 = vsub.f32 %v755_v43, %v1925_v51 }
 0x193   :  { %v918_v62 = vadd.f32 %v914_v53, %v874_v59  ;;  %v946_v2 = vadd.f32 %v1405_v47, %v902_v16  ;;  %v387_v55 = vmul.f32 %v1411_v38, %v2532_v20  ;;  %1424 = vpow2.f32 %v678_v27 }
 0x194   :  { %v1413_v58 = vpop.eup %1412  ;;  %v722_v34 = vmul.f32 1.442695, %v715_v36  ;;  %v799_v28 = vmul.f32 %v2088_v3, %v2519_v18  ;;  %v766_v9 = vmul.f32 1.442695, %v759_v32  ;;  %v843_v57 = vmul.f32 %v2098_v24, %v2519_v18 }
 0x195   :  { %v962_v54 = vadd.f32 %v958_v37, %v918_v62  ;;  %v990_v14 = vadd.f32 %v1407_v5, %v946_v2  ;;  %v419_v22 = vadd.f32 %v1413_v58, %v1411_v38  ;;  %v431_v35 = vmul.f32 %v1413_v58, %v1783_v45 }
 0x196   :  { %v1415_v44 = vpop.eup %1414  ;;  %1426 = vpow2.f32 %v722_v34  ;;  %v803_v10 = vsub.f32 %v799_v28, %v1925_v51  ;;  %v847_v42 = vsub.f32 %v843_v57, %v1925_v51  ;;  %v887_v43 = vmul.f32 %v2120_v23, %v2519_v18 }
 0x197   :  { %v1006_v63 = vadd.f32 %v1002_v33, %v962_v54  ;;  %v1034_v53 = vadd.f32 %v1409_v1, %v990_v14  ;;  %v435_v61 = vadd.f32 %v431_v35, %v387_v55  ;;  %v463_v8 = vadd.f32 %v1415_v44, %v419_v22  ;;  %v1417_v25 = vpop.eup %1416 }
 0x198   :  { %v475_v3 = vmul.f32 %v1415_v44, %v1787_v48  ;;  %1428 = vpow2.f32 %v766_v9  ;;  %v810_v15 = vmul.f32 1.442695, %v803_v10  ;;  %v519_v47 = vmul.f32 %v1417_v25, %v1791_v49 }
 0x199   :  { %v1050_v45 = vadd.f32 %v1046_v39, %v1006_v63  ;;  %1430 = vrcp.f32 %v1034_v53  ;;  %v507_v21 = vadd.f32 %v1417_v25, %v463_v8  ;;  %v854_v24 = vmul.f32 1.442695, %v847_v42 }
 0x19a   :  { %v1419_v40 = vpop.eup %1418  ;;  %v479_v13 = vadd.f32 %v475_v3, %v435_v61  ;;  %1432 = vpow2.f32 %v810_v15  ;;  %v931_v16 = vmul.f32 %v2128_v29, %v2519_v18  ;;  %v975_v52 = vmul.f32 %v2141_v12, %v2519_v18 }
 0x19b   :  { %v1421_v5 = vpop.eup %1420  ;;  %v551_v59 = vadd.f32 %v1419_v40, %v507_v21  ;;  %v563_v48 = vmul.f32 %v1419_v40, %v2006_v46  ;;  %1434 = vpow2.f32 %v854_v24  ;;  %v891_v56 = vsub.f32 %v887_v43, %v1925_v51 }
 0x19c   :  { %v1423_v37 = vpop.eup %1422  ;;  %v523_v1 = vadd.f32 %v519_v47, %v479_v13  ;;  %v607_v49 = vmul.f32 %v1421_v5, %v2019_v0  ;;  %v935_v27 = vsub.f32 %v931_v16, %v1925_v51  ;;  %v979_v46 = vsub.f32 %v975_v52, %v1925_v51 }
 0x19d   :  { %v595_v33 = vadd.f32 %v1421_v5, %v551_v59  ;;  %v651_v23 = vmul.f32 %v1423_v37, %v2032_v11  ;;  %v1425_v36 = vpop.eup %1424  ;;  %v898_v29 = vmul.f32 1.442695, %v891_v56  ;;  %v1019_v12 = vmul.f32 %v2150_v19, %v2519_v18 }
 0x19e   :  { %v567_v38 = vadd.f32 %v563_v48, %v523_v1  ;;  %v695_v2 = vmul.f32 %v1425_v36, %v2061_v50  ;;  %v942_v0 = vmul.f32 1.442695, %v935_v27  ;;  %v986_v17 = vmul.f32 1.442695, %v979_v46 }
 0x19f   :  { %v639_v62 = vadd.f32 %v1423_v37, %v595_v33  ;;  %1436 = vpow2.f32 %v898_v29  ;;  %v1023_v11 = vsub.f32 %v1019_v12, %v1925_v51 }
 0x1a0   :  { %v1427_v39 = vpop.eup %1426  ;;  %v611_v32 = vadd.f32 %v607_v49, %v567_v38  ;;  %1438 = vpow2.f32 %v942_v0 }
 0x1a1   :  { %v683_v58 = vadd.f32 %v1425_v36, %v639_v62  ;;  %v739_v20 = vmul.f32 %v1427_v39, %v2075_v6  ;;  %1440 = vpow2.f32 %v986_v17  ;;  %v1030_v28 = vmul.f32 1.442695, %v1023_v11 }
 0x1a2   :  { %v1429_v55 = vpop.eup %1428  ;;  %v655_v34 = vadd.f32 %v651_v23, %v611_v32 }
 0x1a3   :  { %v1431_v54 = vpop.eup %1430  ;;  %v727_v19 = vadd.f32 %v1427_v39, %v683_v58  ;;  %v783_v18 = vmul.f32 %v1429_v55, %v2084_v4  ;;  %1442 = vpow2.f32 %v1030_v28 }
 0x1a4   :  { %v1433_v50 = vpop.eup %1432  ;;  %v1058_v14 = vmul.f32 %v1431_v54, %v1050_v45  ;;  %v699_v22 = vadd.f32 %v695_v2, %v655_v34 }
 0x1a5   :  { %v771_v35 = vadd.f32 %v1429_v55, %v727_v19  ;;  %v827_v44 = vmul.f32 %v1433_v50, %v2094_v31  ;;  %v1435_v51 = vpop.eup %1434 }
 0x1a6   :  { %1061 = vxpose.xlu0.b32.end [2/2] (short) %v1058_v14, 128  ;;  %v743_v9 = vadd.f32 %v739_v20, %v699_v22  ;;  %v871_v10 = vmul.f32 %v1435_v51, %v2116_v41 }
 0x1a7   :  { %v815_v6 = vadd.f32 %v1433_v50, %v771_v35 }
 0x1a8   :  { %v787_v57 = vadd.f32 %v783_v18, %v743_v9 }
 0x1a9   :  { %v859_v63 = vadd.f32 %v1435_v51, %v815_v6  ;;  %v1437_v53 = vpop.eup %1436 }
 0x1aa   :  { %v831_v61 = vadd.f32 %v827_v44, %v787_v57  ;;  %v1439_v8 = vpop.eup %1438  ;;  %v915_v4 = vmul.f32 %v1437_v53, %v2124_v30 }
 0x1ab   :  { %v903_v25 = vadd.f32 %v1437_v53, %v859_v63  ;;  %v1441_v3 = vpop.eup %1440  ;;  %v959_v42 = vmul.f32 %v1439_v8, %v2137_v26 }
 0x1ac   :  { %v875_v15 = vadd.f32 %v871_v10, %v831_v61  ;;  %v1003_v31 = vmul.f32 %v1441_v3, %v2145_v60 }
 0x1ad   :  { %v947_v45 = vadd.f32 %v1439_v8, %v903_v25  ;;  %v1443_v21 = vpop.eup %1442 }
 0x1ae   :  { %v919_v47 = vadd.f32 %v915_v4, %v875_v15  ;;  %v1047_v41 = vmul.f32 %v1443_v21, %v2154_v7 }
 0x1af   :  { %v991_v40 = vadd.f32 %v1441_v3, %v947_v45 }
 0x1b0   :  { %v963_v13 = vadd.f32 %v959_v42, %v919_v47 }
 0x1b1   :  { %v1035_v24 = vadd.f32 %v1443_v21, %v991_v40 }
 0x1b2   :  { %v1007_v43 = vadd.f32 %v1003_v31, %v963_v13 }
 0x1b3   :  { %1444 = vrcp.f32 %v1035_v24 }
 0x1b4   :  { %v1051_v5 = vadd.f32 %v1047_v41, %v1007_v43 }
 0x1bd   :  { %v1445_v59 = vpop.eup %1444 }
 0x1be   :  { %v1059_v48 = vmul.f32 %v1445_v59, %v1051_v5 }
 0x1c0   :  { %1093 = vxpose.xlu1.b32.end [2/2] (short) %v1059_v48, 128 }
 0x222   :  { %v1076_v30 = vpop.trf.xlu0 }
 0x223   :  { %1124 = vst.msk [vmem:[%s2426_s3] sm:$0xff] %vm88_vm0, %v1076_v30 }
 0x226   :  { %v1077_v26 = vpop.trf.xlu0 }
 0x227   :  { %1125 = vst.msk [vmem:[%s2426_s3 + $0x8] sm:$0xff] %vm88_vm0, %v1077_v26 }
 0x22a   :  { %v1078_v60 = vpop.trf.xlu0 }
 0x22b   :  { %1126 = vst.msk [vmem:[%s2426_s3 + $0x10] sm:$0xff] %vm88_vm0, %v1078_v60 }
 0x22e   :  { %v1079_v7 = vpop.trf.xlu0 }
 0x22f   :  { %1127 = vst.msk [vmem:[%s2426_s3 + $0x18] sm:$0xff] %vm88_vm0, %v1079_v7 }
 0x232   :  { %v1080_v16 = vpop.trf.xlu0 }
 0x233   :  { %1128 = vst.msk [vmem:[%s2426_s3 + $0x20] sm:$0xff] %vm88_vm0, %v1080_v16 }
 0x236   :  { %v1081_v52 = vpop.trf.xlu0 }
 0x237   :  { %1129 = vst.msk [vmem:[%s2426_s3 + $0x28] sm:$0xff] %vm88_vm0, %v1081_v52 }
 0x23a   :  { %v1082_v37 = vpop.trf.xlu0 }
 0x23b   :  { %1130 = vst.msk [vmem:[%s2426_s3 + $0x30] sm:$0xff] %vm88_vm0, %v1082_v37 }
 0x23c   :  { %v1108_v1 = vpop.trf.xlu1 }
 0x23d   :  { %1140 = vst.msk [vmem:[%s2426_s3 + $0x80] sm:$0xff] %vm88_vm0, %v1108_v1 }
 0x23e   :  { %v1083_v49 = vpop.trf.xlu0 }
 0x23f   :  { %1131 = vst.msk [vmem:[%s2426_s3 + $0x38] sm:$0xff] %vm88_vm0, %v1083_v49 }
 0x240   :  { %v1109_v56 = vpop.trf.xlu1 }
 0x241   :  { %1141 = vst.msk [vmem:[%s2426_s3 + $0x88] sm:$0xff] %vm88_vm0, %v1109_v56 }
 0x242   :  { %v1084_v33 = vpop.trf.xlu0 }
 0x243   :  { %1132 = vst.msk [vmem:[%s2426_s3 + $0x40] sm:$0xff] %vm88_vm0, %v1084_v33 }
 0x244   :  { %v1110_v23 = vpop.trf.xlu1 }
 0x245   :  { %1142 = vst.msk [vmem:[%s2426_s3 + $0x90] sm:$0xff] %vm88_vm0, %v1110_v23 }
 0x246   :  { %v1085_v27 = vpop.trf.xlu0 }
 0x247   :  { %1133 = vst.msk [vmem:[%s2426_s3 + $0x48] sm:$0xff] %vm88_vm0, %v1085_v27 }
 0x248   :  { %v1111_v46 = vpop.trf.xlu1 }
 0x249   :  { %1143 = vst.msk [vmem:[%s2426_s3 + $0x98] sm:$0xff] %vm88_vm0, %v1111_v46 }
 0x24a   :  { %v1086_v36 = vpop.trf.xlu0 }
 0x24b   :  { %1134 = vst.msk [vmem:[%s2426_s3 + $0x50] sm:$0xff] %vm88_vm0, %v1086_v36 }
 0x24c   :  { %v1112_v38 = vpop.trf.xlu1 }
 0x24d   :  { %1144 = vst.msk [vmem:[%s2426_s3 + $0xa0] sm:$0xff] %vm88_vm0, %v1112_v38 }
 0x24e   :  { %v1087_v29 = vpop.trf.xlu0 }
 0x24f   :  { %1135 = vst.msk [vmem:[%s2426_s3 + $0x58] sm:$0xff] %vm88_vm0, %v1087_v29 }
 0x250   :  { %v1113_v12 = vpop.trf.xlu1 }
 0x251   :  { %1145 = vst.msk [vmem:[%s2426_s3 + $0xa8] sm:$0xff] %vm88_vm0, %v1113_v12 }
 0x252   :  { %v1088_v62 = vpop.trf.xlu0 }
 0x253   :  { %1136 = vst.msk [vmem:[%s2426_s3 + $0x60] sm:$0xff] %vm88_vm0, %v1088_v62 }
 0x254   :  { %v1114_v2 = vpop.trf.xlu1 }
 0x255   :  { %1146 = vst.msk [vmem:[%s2426_s3 + $0xb0] sm:$0xff] %vm88_vm0, %v1114_v2 }
 0x256   :  { %v1089_v0 = vpop.trf.xlu0 }
 0x257   :  { %1137 = vst.msk [vmem:[%s2426_s3 + $0x68] sm:$0xff] %vm88_vm0, %v1089_v0 }
 0x258   :  { %v1115_v17 = vpop.trf.xlu1 }
 0x259   :  { %1147 = vst.msk [vmem:[%s2426_s3 + $0xb8] sm:$0xff] %vm88_vm0, %v1115_v17 }
 0x25a   :  { %v1090_v39 = vpop.trf.xlu0 }
 0x25b   :  { %1138 = vst.msk [vmem:[%s2426_s3 + $0x70] sm:$0xff] %vm88_vm0, %v1090_v39 }
 0x25c   :  { %v1116_v32 = vpop.trf.xlu1 }
 0x25d   :  { %1148 = vst.msk [vmem:[%s2426_s3 + $0xc0] sm:$0xff] %vm88_vm0, %v1116_v32 }
 0x25e   :  { %v1091_v11 = vpop.trf.xlu0 }
 0x25f   :  { %1139 = vst.msk [vmem:[%s2426_s3 + $0x78] sm:$0xff] %vm88_vm0, %v1091_v11 }
 0x260   :  { %v1117_v58 = vpop.trf.xlu1 }
 0x261   :  { %1149 = vst.msk [vmem:[%s2426_s3 + $0xc8] sm:$0xff] %vm88_vm0, %v1117_v58 }
 0x264   :  { %v1118_v20 = vpop.trf.xlu1 }
 0x265   :  { %1150 = vst.msk [vmem:[%s2426_s3 + $0xd0] sm:$0xff] %vm88_vm0, %v1118_v20 }
 0x268   :  { %v1119_v55 = vpop.trf.xlu1 }
 0x269   :  { %1151 = vst.msk [vmem:[%s2426_s3 + $0xd8] sm:$0xff] %vm88_vm0, %v1119_v55 }
 0x26c   :  { %v1120_v34 = vpop.trf.xlu1 }
 0x26d   :  { %1152 = vst.msk [vmem:[%s2426_s3 + $0xe0] sm:$0xff] %vm88_vm0, %v1120_v34 }
 0x270   :  { %v1121_v28 = vpop.trf.xlu1 }
 0x271   :  { %1153 = vst.msk [vmem:[%s2426_s3 + $0xe8] sm:$0xff] %vm88_vm0, %v1121_v28 }
 0x274   :  { %v1122_v54 = vpop.trf.xlu1 }
 0x275   :  { %1154 = vst.msk [vmem:[%s2426_s3 + $0xf0] sm:$0xff] %vm88_vm0, %v1122_v54 }
 0x278   :  { %v1123_v19 = vpop.trf.xlu1 }
 0x279   :  { %1155 = vst.msk [vmem:[%s2426_s3 + $0xf8] sm:$0xff] %vm88_vm0, %v1123_v19 }

</bundles_post_ra>
